<compile_context>
chip_gen: v6e
topology: v6e:2x2x1
jax: 0.10.0
libtpu: 0.0.40
codegen_flags: <defaults>
</compile_context>

<pallas_src>
import functools

import jax
import jax.numpy as jnp
from jax.experimental import pallas as pl
from jax.experimental.pallas import tpu as pltpu


def _round_up(x, m):
    return (x + m - 1) // m * m


def _gru_recurrence_kernel(gi_ref, whh_ref, bhh_ref, h_ref, *, seq_len, hidden_pad):
    """Entire GRU recurrence for one batch tile in a single kernel invocation.

    gi_ref : (T, Bt, 3*Hp) f32   precomputed x-projection (incl. b_ih), gate-padded
    whh_ref: (Hp, 3*Hp)   bf16   W_hh^T, gate-padded, resident in VMEM
    bhh_ref: (1, 3*Hp)    f32    b_hh, gate-padded
    h_ref  : (Bt, Hp)     f32    output: last hidden state
    """
    Hp = hidden_pad
    whh = whh_ref[...]            # hoisted: resident across the whole time loop
    bhh = bhh_ref[...]

    def step(t, h):
        gi = gi_ref[t]                                     # (Bt, 3*Hp) f32
        # Recurrent matmul: bf16 operands, f32 accumulation on the MXU.
        gh = jnp.dot(h.astype(whh.dtype), whh,
                     preferred_element_type=jnp.float32) + bhh
        # Gate slices land on 128-lane boundaries (Hp % 128 == 0). Order: [r, z, n].
        r = jax.nn.sigmoid(gi[:, 0:Hp] + gh[:, 0:Hp])
        z = jax.nn.sigmoid(gi[:, Hp:2 * Hp] + gh[:, Hp:2 * Hp])
        n = jnp.tanh(gi[:, 2 * Hp:3 * Hp] + r * gh[:, 2 * Hp:3 * Hp])
        return (1.0 - z) * n + z * h                       # f32 carry

    h0 = jnp.zeros(h_ref.shape, jnp.float32)               # h0 = zeros (PyTorch)
    h_ref[...] = jax.lax.fori_loop(0, seq_len, step, h0, unroll=True)


def neural_net_gru_forward(x_btI, params, *, b_tile=8, recurrent_dtype=jnp.bfloat16):
    """x_btI: (B, T, I) float32, batch_first — same layout as the PyTorch module."""
    w_ih, w_hh, b_ih, b_hh, w_fc, b_fc = params
    B, T, I = x_btI.shape
    H = w_hh.shape[1]                  # w_hh: (3H, H)
    assert b_tile % 8 == 0

    Hp = _round_up(H, 128)             # each gate slice lane-aligned
    Bp = _round_up(B, b_tile)          # sublane-aligned batch

    # --- (1) hoist the x-projection: one batched matmul for ALL timesteps (XLA) ---
    gi = (x_btI.reshape(B * T, I) @ w_ih.T + b_ih).reshape(B, T, 3, H)
    gi = jnp.transpose(gi, (1, 0, 2, 3))                         # (T, B, 3, H)
    gi = jnp.pad(gi, ((0, 0), (0, Bp - B), (0, 0), (0, Hp - H)))  # gate/batch padding
    gi = gi.reshape(T, Bp, 3 * Hp).astype(jnp.float32)

    # --- (3)/(5) gate-padded recurrent weights, bf16 operands ---
    whh = jnp.pad(w_hh.T.reshape(H, 3, H), ((0, Hp - H), (0, 0), (0, Hp - H)))
    whh = whh.reshape(Hp, 3 * Hp).astype(recurrent_dtype)
    bhh = jnp.pad(b_hh.reshape(3, H), ((0, 0), (0, Hp - H)))
    bhh = bhh.reshape(1, 3 * Hp).astype(jnp.float32)

    kernel = functools.partial(_gru_recurrence_kernel, seq_len=T, hidden_pad=Hp)

    num_b_tiles = Bp // b_tile
    h_last = pl.pallas_call(
        kernel,
        out_shape=jax.ShapeDtypeStruct((Bp, Hp), jnp.float32),
        grid_spec=pltpu.PrefetchScalarGridSpec(
            num_scalar_prefetch=0,
            grid=(num_b_tiles,),                               # batch tiles only; T is inside
            in_specs=[
                pl.BlockSpec((T, b_tile, 3 * Hp), lambda b: (0, b, 0)),  # gi (per batch tile)
                pl.BlockSpec((Hp, 3 * Hp), lambda b: (0, 0)),            # W_hh^T (resident)
                pl.BlockSpec((1, 3 * Hp), lambda b: (0, 0)),             # b_hh
            ],
            out_specs=pl.BlockSpec((b_tile, Hp), lambda b: (b, 0)),      # lane-dense h_last
        ),
        compiler_params=pltpu.CompilerParams(
            dimension_semantics=("parallel",),        # batch tiles independent (v7x dual-TC)
            vmem_limit_bytes=32 * 1024 * 1024,        # explicit VMEM budget (v7x headroom)
        ),
    )(gi, whh, bhh)

    # --- (4) tiny final Linear in plain XLA on the unpadded last hidden state ---
    return h_last[:B, :H] @ w_fc.T + b_fc


def _init_params(key, input_size, hidden_size, num_classes):
    """Deterministic init mimicking PyTorch's U(-1/sqrt(H), 1/sqrt(H))."""
    k = jax.random.split(key, 6)
    s = 1.0 / jnp.sqrt(hidden_size)
    w_ih = jax.random.uniform(k[0], (3 * hidden_size, input_size), jnp.float32, -s, s)
    w_hh = jax.random.uniform(k[1], (3 * hidden_size, hidden_size), jnp.float32, -s, s)
    b_ih = jax.random.uniform(k[2], (3 * hidden_size,), jnp.float32, -s, s)
    b_hh = jax.random.uniform(k[3], (3 * hidden_size,), jnp.float32, -s, s)
    w_fc = jax.random.uniform(k[4], (num_classes, hidden_size), jnp.float32, -s, s)
    b_fc = jax.random.uniform(k[5], (num_classes,), jnp.float32, -s, s)
    return (w_ih, w_hh, b_ih, b_hh, w_fc, b_fc)


def _reference_forward(x_btI, params, *, recurrent_dtype=jnp.float32):
    """Pure-JAX reference of the PyTorch forward.

    recurrent_dtype=float32  -> exact PyTorch GRU semantics.
    recurrent_dtype=bfloat16 -> same bf16 rounding of (h, W_hh) as the kernel's
                                recurrent matmul (for a tight numerical check).
    """
    w_ih, w_hh, b_ih, b_hh, w_fc, b_fc = params
    B, T, I = x_btI.shape
    H = w_hh.shape[1]
    gi_all = (x_btI.reshape(B * T, I) @ w_ih.T + b_ih).reshape(B, T, 3 * H)
    whh_t = w_hh.T.astype(recurrent_dtype)

    def step(h, gi):
        gh = jnp.dot(h.astype(recurrent_dtype), whh_t,
                     preferred_element_type=jnp.float32) + b_hh
        r = jax.nn.sigmoid(gi[:, :H] + gh[:, :H])
        z = jax.nn.sigmoid(gi[:, H:2 * H] + gh[:, H:2 * H])
        n = jnp.tanh(gi[:, 2 * H:] + r * gh[:, 2 * H:])
        return (1.0 - z) * n + z * h, None

    h0 = jnp.zeros((B, H), jnp.float32)
    h_last, _ = jax.lax.scan(step, h0, jnp.transpose(gi_all, (1, 0, 2)))
    return h_last @ w_fc.T + b_fc


if __name__ == "__main__":
    B, T, I, H, C = 2, 8, 16, 32, 4   # batch, seq_len, input_size, hidden_size, num_classes

    key = jax.random.PRNGKey(0)
    k_x, k_p = jax.random.split(key)
    x = jax.random.normal(k_x, (B, T, I), jnp.float32)   # batch_first input like PyTorch
    params = _init_params(k_p, I, H, C)

    out = jax.block_until_ready(neural_net_gru_forward(x, params))

    ref_matched = _reference_forward(x, params, recurrent_dtype=jnp.bfloat16)
    ref_f32 = _reference_forward(x, params, recurrent_dtype=jnp.float32)

    assert out.shape == (B, C)
    # Tight check against a reference with the same bf16 recurrent-matmul rounding.
    assert jnp.allclose(out, ref_matched, atol=1e-3, rtol=1e-3), (out, ref_matched)
    # Looser check against exact f32 PyTorch semantics (bf16 weight rounding only).
    assert jnp.allclose(out, ref_f32, atol=5e-2, rtol=5e-2), (out, ref_f32)

    print("KERNEL_OK")
</pallas_src>

<mosaic_0001>
module attributes {stable_mosaic.version = 11 : i64} {
  func.func @_gru_recurrence_kernel(%arg0: i32, %arg1: memref<8x8x384xf32, #tpu.memory_space<vmem>>, %arg2: memref<128x384xbf16, #tpu.memory_space<vmem>>, %arg3: memref<1x384xf32, #tpu.memory_space<vmem>>, %arg4: memref<8x128xf32, #tpu.memory_space<vmem>>) attributes {dimension_semantics = [#tpu.dimension_semantics<parallel>], iteration_bounds = array<i64: 1>, scalar_prefetch = 0 : i64, scratch_operands = 0 : i64, tpu.core_type = #tpu.core_type<tc>, window_params = [{transform_indices = @transform_0, window_bounds = array<i64: 8, 8, 384>}, {pipeline_mode = #tpu.pipeline_mode<synchronous>, transform_indices = @transform_1, window_bounds = array<i64: 128, 384>}, {pipeline_mode = #tpu.pipeline_mode<synchronous>, transform_indices = @transform_2, window_bounds = array<i64: 1, 384>}, {transform_indices = @transform_3, window_bounds = array<i64: 8, 128>}]} {
    %c0 = arith.constant 0 : index
    %c0_0 = arith.constant 0 : index
    %0 = vector.load %arg2[%c0, %c0_0] : memref<128x384xbf16, #tpu.memory_space<vmem>>, vector<128x384xbf16>
    %c0_1 = arith.constant 0 : index
    %c0_2 = arith.constant 0 : index
    %1 = vector.load %arg3[%c0_1, %c0_2] : memref<1x384xf32, #tpu.memory_space<vmem>>, vector<1x384xf32>
    %cst = arith.constant 0.000000e+00 : f32
    %2 = vector.broadcast %cst : f32 to vector<8x128xf32>
    %c0_i32 = arith.constant 0 : i32
    %3 = arith.index_cast %c0_i32 : i32 to index
    %c0_3 = arith.constant 0 : index
    %c0_4 = arith.constant 0 : index
    %4 = vector.load %arg1[%3, %c0_3, %c0_4] : memref<8x8x384xf32, #tpu.memory_space<vmem>>, vector<1x8x384xf32>
    %5 = vector.shape_cast %4 : vector<1x8x384xf32> to vector<8x384xf32>
    %6 = arith.truncf %2 : vector<8x128xf32> to vector<8x128xbf16>
    %cst_5 = arith.constant dense<0.000000e+00> : vector<8x384xf32>
    %7 = tpu.matmul %6, %0, %cst_5 {dimension_numbers = #tpu.dot_dimension_numbers<[1], [0], [0], [1], [0, 0, 1, 1], [], []>} : vector<8x128xbf16>, vector<128x384xbf16>, vector<8x384xf32> -> vector<8x384xf32>
    %8 = vector.broadcast %1 : vector<1x384xf32> to vector<8x384xf32>
    %9 = arith.addf %7, %8 : vector<8x384xf32>
    %10 = vector.extract_strided_slice %5 {offsets = [0, 0], sizes = [8, 128], strides = [1, 1]} : vector<8x384xf32> to vector<8x128xf32>
    %11 = vector.extract_strided_slice %9 {offsets = [0, 0], sizes = [8, 128], strides = [1, 1]} : vector<8x384xf32> to vector<8x128xf32>
    %12 = arith.addf %10, %11 : vector<8x128xf32>
    %13 = arith.negf %12 : vector<8x128xf32>
    %14 = math.exp %13 : vector<8x128xf32>
    %cst_6 = arith.constant 1.000000e+00 : f32
    %15 = vector.broadcast %cst_6 : f32 to vector<8x128xf32>
    %16 = arith.addf %15, %14 : vector<8x128xf32>
    %17 = arith.divf %15, %16 : vector<8x128xf32>
    %18 = vector.extract_strided_slice %5 {offsets = [0, 128], sizes = [8, 128], strides = [1, 1]} : vector<8x384xf32> to vector<8x128xf32>
    %19 = vector.extract_strided_slice %9 {offsets = [0, 128], sizes = [8, 128], strides = [1, 1]} : vector<8x384xf32> to vector<8x128xf32>
    %20 = arith.addf %18, %19 : vector<8x128xf32>
    %21 = arith.negf %20 : vector<8x128xf32>
    %22 = math.exp %21 : vector<8x128xf32>
    %cst_7 = arith.constant 1.000000e+00 : f32
    %23 = vector.broadcast %cst_7 : f32 to vector<8x128xf32>
    %24 = arith.addf %23, %22 : vector<8x128xf32>
    %25 = arith.divf %23, %24 : vector<8x128xf32>
    %26 = vector.extract_strided_slice %5 {offsets = [0, 256], sizes = [8, 128], strides = [1, 1]} : vector<8x384xf32> to vector<8x128xf32>
    %27 = vector.extract_strided_slice %9 {offsets = [0, 256], sizes = [8, 128], strides = [1, 1]} : vector<8x384xf32> to vector<8x128xf32>
    %28 = arith.mulf %17, %27 : vector<8x128xf32>
    %29 = arith.addf %26, %28 : vector<8x128xf32>
    %30 = math.tanh %29 : vector<8x128xf32>
    %cst_8 = arith.constant 1.000000e+00 : f32
    %31 = vector.broadcast %cst_8 : f32 to vector<8x128xf32>
    %32 = arith.subf %31, %25 : vector<8x128xf32>
    %33 = arith.mulf %32, %30 : vector<8x128xf32>
    %34 = arith.mulf %25, %2 : vector<8x128xf32>
    %35 = arith.addf %33, %34 : vector<8x128xf32>
    %c1_i32 = arith.constant 1 : i32
    %36 = arith.index_cast %c1_i32 : i32 to index
    %c0_9 = arith.constant 0 : index
    %c0_10 = arith.constant 0 : index
    %37 = vector.load %arg1[%36, %c0_9, %c0_10] : memref<8x8x384xf32, #tpu.memory_space<vmem>>, vector<1x8x384xf32>
    %38 = vector.shape_cast %37 : vector<1x8x384xf32> to vector<8x384xf32>
    %39 = arith.truncf %35 : vector<8x128xf32> to vector<8x128xbf16>
    %cst_11 = arith.constant dense<0.000000e+00> : vector<8x384xf32>
    %40 = tpu.matmul %39, %0, %cst_11 {dimension_numbers = #tpu.dot_dimension_numbers<[1], [0], [0], [1], [0, 0, 1, 1], [], []>} : vector<8x128xbf16>, vector<128x384xbf16>, vector<8x384xf32> -> vector<8x384xf32>
    %41 = vector.broadcast %1 : vector<1x384xf32> to vector<8x384xf32>
    %42 = arith.addf %40, %41 : vector<8x384xf32>
    %43 = vector.extract_strided_slice %38 {offsets = [0, 0], sizes = [8, 128], strides = [1, 1]} : vector<8x384xf32> to vector<8x128xf32>
    %44 = vector.extract_strided_slice %42 {offsets = [0, 0], sizes = [8, 128], strides = [1, 1]} : vector<8x384xf32> to vector<8x128xf32>
    %45 = arith.addf %43, %44 : vector<8x128xf32>
    %46 = arith.negf %45 : vector<8x128xf32>
    %47 = math.exp %46 : vector<8x128xf32>
    %cst_12 = arith.constant 1.000000e+00 : f32
    %48 = vector.broadcast %cst_12 : f32 to vector<8x128xf32>
    %49 = arith.addf %48, %47 : vector<8x128xf32>
    %50 = arith.divf %48, %49 : vector<8x128xf32>
    %51 = vector.extract_strided_slice %38 {offsets = [0, 128], sizes = [8, 128], strides = [1, 1]} : vector<8x384xf32> to vector<8x128xf32>
    %52 = vector.extract_strided_slice %42 {offsets = [0, 128], sizes = [8, 128], strides = [1, 1]} : vector<8x384xf32> to vector<8x128xf32>
    %53 = arith.addf %51, %52 : vector<8x128xf32>
    %54 = arith.negf %53 : vector<8x128xf32>
    %55 = math.exp %54 : vector<8x128xf32>
    %cst_13 = arith.constant 1.000000e+00 : f32
    %56 = vector.broadcast %cst_13 : f32 to vector<8x128xf32>
    %57 = arith.addf %56, %55 : vector<8x128xf32>
    %58 = arith.divf %56, %57 : vector<8x128xf32>
    %59 = vector.extract_strided_slice %38 {offsets = [0, 256], sizes = [8, 128], strides = [1, 1]} : vector<8x384xf32> to vector<8x128xf32>
    %60 = vector.extract_strided_slice %42 {offsets = [0, 256], sizes = [8, 128], strides = [1, 1]} : vector<8x384xf32> to vector<8x128xf32>
    %61 = arith.mulf %50, %60 : vector<8x128xf32>
    %62 = arith.addf %59, %61 : vector<8x128xf32>
    %63 = math.tanh %62 : vector<8x128xf32>
    %cst_14 = arith.constant 1.000000e+00 : f32
    %64 = vector.broadcast %cst_14 : f32 to vector<8x128xf32>
    %65 = arith.subf %64, %58 : vector<8x128xf32>
    %66 = arith.mulf %65, %63 : vector<8x128xf32>
    %67 = arith.mulf %58, %35 : vector<8x128xf32>
    %68 = arith.addf %66, %67 : vector<8x128xf32>
    %c2_i32 = arith.constant 2 : i32
    %69 = arith.index_cast %c2_i32 : i32 to index
    %c0_15 = arith.constant 0 : index
    %c0_16 = arith.constant 0 : index
    %70 = vector.load %arg1[%69, %c0_15, %c0_16] : memref<8x8x384xf32, #tpu.memory_space<vmem>>, vector<1x8x384xf32>
    %71 = vector.shape_cast %70 : vector<1x8x384xf32> to vector<8x384xf32>
    %72 = arith.truncf %68 : vector<8x128xf32> to vector<8x128xbf16>
    %cst_17 = arith.constant dense<0.000000e+00> : vector<8x384xf32>
    %73 = tpu.matmul %72, %0, %cst_17 {dimension_numbers = #tpu.dot_dimension_numbers<[1], [0], [0], [1], [0, 0, 1, 1], [], []>} : vector<8x128xbf16>, vector<128x384xbf16>, vector<8x384xf32> -> vector<8x384xf32>
    %74 = vector.broadcast %1 : vector<1x384xf32> to vector<8x384xf32>
    %75 = arith.addf %73, %74 : vector<8x384xf32>
    %76 = vector.extract_strided_slice %71 {offsets = [0, 0], sizes = [8, 128], strides = [1, 1]} : vector<8x384xf32> to vector<8x128xf32>
    %77 = vector.extract_strided_slice %75 {offsets = [0, 0], sizes = [8, 128], strides = [1, 1]} : vector<8x384xf32> to vector<8x128xf32>
    %78 = arith.addf %76, %77 : vector<8x128xf32>
    %79 = arith.negf %78 : vector<8x128xf32>
    %80 = math.exp %79 : vector<8x128xf32>
    %cst_18 = arith.constant 1.000000e+00 : f32
    %81 = vector.broadcast %cst_18 : f32 to vector<8x128xf32>
    %82 = arith.addf %81, %80 : vector<8x128xf32>
    %83 = arith.divf %81, %82 : vector<8x128xf32>
    %84 = vector.extract_strided_slice %71 {offsets = [0, 128], sizes = [8, 128], strides = [1, 1]} : vector<8x384xf32> to vector<8x128xf32>
    %85 = vector.extract_strided_slice %75 {offsets = [0, 128], sizes = [8, 128], strides = [1, 1]} : vector<8x384xf32> to vector<8x128xf32>
    %86 = arith.addf %84, %85 : vector<8x128xf32>
    %87 = arith.negf %86 : vector<8x128xf32>
    %88 = math.exp %87 : vector<8x128xf32>
    %cst_19 = arith.constant 1.000000e+00 : f32
    %89 = vector.broadcast %cst_19 : f32 to vector<8x128xf32>
    %90 = arith.addf %89, %88 : vector<8x128xf32>
    %91 = arith.divf %89, %90 : vector<8x128xf32>
    %92 = vector.extract_strided_slice %71 {offsets = [0, 256], sizes = [8, 128], strides = [1, 1]} : vector<8x384xf32> to vector<8x128xf32>
    %93 = vector.extract_strided_slice %75 {offsets = [0, 256], sizes = [8, 128], strides = [1, 1]} : vector<8x384xf32> to vector<8x128xf32>
    %94 = arith.mulf %83, %93 : vector<8x128xf32>
    %95 = arith.addf %92, %94 : vector<8x128xf32>
    %96 = math.tanh %95 : vector<8x128xf32>
    %cst_20 = arith.constant 1.000000e+00 : f32
    %97 = vector.broadcast %cst_20 : f32 to vector<8x128xf32>
    %98 = arith.subf %97, %91 : vector<8x128xf32>
    %99 = arith.mulf %98, %96 : vector<8x128xf32>
    %100 = arith.mulf %91, %68 : vector<8x128xf32>
    %101 = arith.addf %99, %100 : vector<8x128xf32>
    %c3_i32 = arith.constant 3 : i32
    %102 = arith.index_cast %c3_i32 : i32 to index
    %c0_21 = arith.constant 0 : index
    %c0_22 = arith.constant 0 : index
    %103 = vector.load %arg1[%102, %c0_21, %c0_22] : memref<8x8x384xf32, #tpu.memory_space<vmem>>, vector<1x8x384xf32>
    %104 = vector.shape_cast %103 : vector<1x8x384xf32> to vector<8x384xf32>
    %105 = arith.truncf %101 : vector<8x128xf32> to vector<8x128xbf16>
    %cst_23 = arith.constant dense<0.000000e+00> : vector<8x384xf32>
    %106 = tpu.matmul %105, %0, %cst_23 {dimension_numbers = #tpu.dot_dimension_numbers<[1], [0], [0], [1], [0, 0, 1, 1], [], []>} : vector<8x128xbf16>, vector<128x384xbf16>, vector<8x384xf32> -> vector<8x384xf32>
    %107 = vector.broadcast %1 : vector<1x384xf32> to vector<8x384xf32>
    %108 = arith.addf %106, %107 : vector<8x384xf32>
    %109 = vector.extract_strided_slice %104 {offsets = [0, 0], sizes = [8, 128], strides = [1, 1]} : vector<8x384xf32> to vector<8x128xf32>
    %110 = vector.extract_strided_slice %108 {offsets = [0, 0], sizes = [8, 128], strides = [1, 1]} : vector<8x384xf32> to vector<8x128xf32>
    %111 = arith.addf %109, %110 : vector<8x128xf32>
    %112 = arith.negf %111 : vector<8x128xf32>
    %113 = math.exp %112 : vector<8x128xf32>
    %cst_24 = arith.constant 1.000000e+00 : f32
    %114 = vector.broadcast %cst_24 : f32 to vector<8x128xf32>
    %115 = arith.addf %114, %113 : vector<8x128xf32>
    %116 = arith.divf %114, %115 : vector<8x128xf32>
    %117 = vector.extract_strided_slice %104 {offsets = [0, 128], sizes = [8, 128], strides = [1, 1]} : vector<8x384xf32> to vector<8x128xf32>
    %118 = vector.extract_strided_slice %108 {offsets = [0, 128], sizes = [8, 128], strides = [1, 1]} : vector<8x384xf32> to vector<8x128xf32>
    %119 = arith.addf %117, %118 : vector<8x128xf32>
    %120 = arith.negf %119 : vector<8x128xf32>
    %121 = math.exp %120 : vector<8x128xf32>
    %cst_25 = arith.constant 1.000000e+00 : f32
    %122 = vector.broadcast %cst_25 : f32 to vector<8x128xf32>
    %123 = arith.addf %122, %121 : vector<8x128xf32>
    %124 = arith.divf %122, %123 : vector<8x128xf32>
    %125 = vector.extract_strided_slice %104 {offsets = [0, 256], sizes = [8, 128], strides = [1, 1]} : vector<8x384xf32> to vector<8x128xf32>
    %126 = vector.extract_strided_slice %108 {offsets = [0, 256], sizes = [8, 128], strides = [1, 1]} : vector<8x384xf32> to vector<8x128xf32>
    %127 = arith.mulf %116, %126 : vector<8x128xf32>
    %128 = arith.addf %125, %127 : vector<8x128xf32>
    %129 = math.tanh %128 : vector<8x128xf32>
    %cst_26 = arith.constant 1.000000e+00 : f32
    %130 = vector.broadcast %cst_26 : f32 to vector<8x128xf32>
    %131 = arith.subf %130, %124 : vector<8x128xf32>
    %132 = arith.mulf %131, %129 : vector<8x128xf32>
    %133 = arith.mulf %124, %101 : vector<8x128xf32>
    %134 = arith.addf %132, %133 : vector<8x128xf32>
    %c4_i32 = arith.constant 4 : i32
    %135 = arith.index_cast %c4_i32 : i32 to index
    %c0_27 = arith.constant 0 : index
    %c0_28 = arith.constant 0 : index
    %136 = vector.load %arg1[%135, %c0_27, %c0_28] : memref<8x8x384xf32, #tpu.memory_space<vmem>>, vector<1x8x384xf32>
    %137 = vector.shape_cast %136 : vector<1x8x384xf32> to vector<8x384xf32>
    %138 = arith.truncf %134 : vector<8x128xf32> to vector<8x128xbf16>
    %cst_29 = arith.constant dense<0.000000e+00> : vector<8x384xf32>
    %139 = tpu.matmul %138, %0, %cst_29 {dimension_numbers = #tpu.dot_dimension_numbers<[1], [0], [0], [1], [0, 0, 1, 1], [], []>} : vector<8x128xbf16>, vector<128x384xbf16>, vector<8x384xf32> -> vector<8x384xf32>
    %140 = vector.broadcast %1 : vector<1x384xf32> to vector<8x384xf32>
    %141 = arith.addf %139, %140 : vector<8x384xf32>
    %142 = vector.extract_strided_slice %137 {offsets = [0, 0], sizes = [8, 128], strides = [1, 1]} : vector<8x384xf32> to vector<8x128xf32>
    %143 = vector.extract_strided_slice %141 {offsets = [0, 0], sizes = [8, 128], strides = [1, 1]} : vector<8x384xf32> to vector<8x128xf32>
    %144 = arith.addf %142, %143 : vector<8x128xf32>
    %145 = arith.negf %144 : vector<8x128xf32>
    %146 = math.exp %145 : vector<8x128xf32>
    %cst_30 = arith.constant 1.000000e+00 : f32
    %147 = vector.broadcast %cst_30 : f32 to vector<8x128xf32>
    %148 = arith.addf %147, %146 : vector<8x128xf32>
    %149 = arith.divf %147, %148 : vector<8x128xf32>
    %150 = vector.extract_strided_slice %137 {offsets = [0, 128], sizes = [8, 128], strides = [1, 1]} : vector<8x384xf32> to vector<8x128xf32>
    %151 = vector.extract_strided_slice %141 {offsets = [0, 128], sizes = [8, 128], strides = [1, 1]} : vector<8x384xf32> to vector<8x128xf32>
    %152 = arith.addf %150, %151 : vector<8x128xf32>
    %153 = arith.negf %152 : vector<8x128xf32>
    %154 = math.exp %153 : vector<8x128xf32>
    %cst_31 = arith.constant 1.000000e+00 : f32
    %155 = vector.broadcast %cst_31 : f32 to vector<8x128xf32>
    %156 = arith.addf %155, %154 : vector<8x128xf32>
    %157 = arith.divf %155, %156 : vector<8x128xf32>
    %158 = vector.extract_strided_slice %137 {offsets = [0, 256], sizes = [8, 128], strides = [1, 1]} : vector<8x384xf32> to vector<8x128xf32>
    %159 = vector.extract_strided_slice %141 {offsets = [0, 256], sizes = [8, 128], strides = [1, 1]} : vector<8x384xf32> to vector<8x128xf32>
    %160 = arith.mulf %149, %159 : vector<8x128xf32>
    %161 = arith.addf %158, %160 : vector<8x128xf32>
    %162 = math.tanh %161 : vector<8x128xf32>
    %cst_32 = arith.constant 1.000000e+00 : f32
    %163 = vector.broadcast %cst_32 : f32 to vector<8x128xf32>
    %164 = arith.subf %163, %157 : vector<8x128xf32>
    %165 = arith.mulf %164, %162 : vector<8x128xf32>
    %166 = arith.mulf %157, %134 : vector<8x128xf32>
    %167 = arith.addf %165, %166 : vector<8x128xf32>
    %c5_i32 = arith.constant 5 : i32
    %168 = arith.index_cast %c5_i32 : i32 to index
    %c0_33 = arith.constant 0 : index
    %c0_34 = arith.constant 0 : index
    %169 = vector.load %arg1[%168, %c0_33, %c0_34] : memref<8x8x384xf32, #tpu.memory_space<vmem>>, vector<1x8x384xf32>
    %170 = vector.shape_cast %169 : vector<1x8x384xf32> to vector<8x384xf32>
    %171 = arith.truncf %167 : vector<8x128xf32> to vector<8x128xbf16>
    %cst_35 = arith.constant dense<0.000000e+00> : vector<8x384xf32>
    %172 = tpu.matmul %171, %0, %cst_35 {dimension_numbers = #tpu.dot_dimension_numbers<[1], [0], [0], [1], [0, 0, 1, 1], [], []>} : vector<8x128xbf16>, vector<128x384xbf16>, vector<8x384xf32> -> vector<8x384xf32>
    %173 = vector.broadcast %1 : vector<1x384xf32> to vector<8x384xf32>
    %174 = arith.addf %172, %173 : vector<8x384xf32>
    %175 = vector.extract_strided_slice %170 {offsets = [0, 0], sizes = [8, 128], strides = [1, 1]} : vector<8x384xf32> to vector<8x128xf32>
    %176 = vector.extract_strided_slice %174 {offsets = [0, 0], sizes = [8, 128], strides = [1, 1]} : vector<8x384xf32> to vector<8x128xf32>
    %177 = arith.addf %175, %176 : vector<8x128xf32>
    %178 = arith.negf %177 : vector<8x128xf32>
    %179 = math.exp %178 : vector<8x128xf32>
    %cst_36 = arith.constant 1.000000e+00 : f32
    %180 = vector.broadcast %cst_36 : f32 to vector<8x128xf32>
    %181 = arith.addf %180, %179 : vector<8x128xf32>
    %182 = arith.divf %180, %181 : vector<8x128xf32>
    %183 = vector.extract_strided_slice %170 {offsets = [0, 128], sizes = [8, 128], strides = [1, 1]} : vector<8x384xf32> to vector<8x128xf32>
    %184 = vector.extract_strided_slice %174 {offsets = [0, 128], sizes = [8, 128], strides = [1, 1]} : vector<8x384xf32> to vector<8x128xf32>
    %185 = arith.addf %183, %184 : vector<8x128xf32>
    %186 = arith.negf %185 : vector<8x128xf32>
    %187 = math.exp %186 : vector<8x128xf32>
    %cst_37 = arith.constant 1.000000e+00 : f32
    %188 = vector.broadcast %cst_37 : f32 to vector<8x128xf32>
    %189 = arith.addf %188, %187 : vector<8x128xf32>
    %190 = arith.divf %188, %189 : vector<8x128xf32>
    %191 = vector.extract_strided_slice %170 {offsets = [0, 256], sizes = [8, 128], strides = [1, 1]} : vector<8x384xf32> to vector<8x128xf32>
    %192 = vector.extract_strided_slice %174 {offsets = [0, 256], sizes = [8, 128], strides = [1, 1]} : vector<8x384xf32> to vector<8x128xf32>
    %193 = arith.mulf %182, %192 : vector<8x128xf32>
    %194 = arith.addf %191, %193 : vector<8x128xf32>
    %195 = math.tanh %194 : vector<8x128xf32>
    %cst_38 = arith.constant 1.000000e+00 : f32
    %196 = vector.broadcast %cst_38 : f32 to vector<8x128xf32>
    %197 = arith.subf %196, %190 : vector<8x128xf32>
    %198 = arith.mulf %197, %195 : vector<8x128xf32>
    %199 = arith.mulf %190, %167 : vector<8x128xf32>
    %200 = arith.addf %198, %199 : vector<8x128xf32>
    %c6_i32 = arith.constant 6 : i32
    %201 = arith.index_cast %c6_i32 : i32 to index
    %c0_39 = arith.constant 0 : index
    %c0_40 = arith.constant 0 : index
    %202 = vector.load %arg1[%201, %c0_39, %c0_40] : memref<8x8x384xf32, #tpu.memory_space<vmem>>, vector<1x8x384xf32>
    %203 = vector.shape_cast %202 : vector<1x8x384xf32> to vector<8x384xf32>
    %204 = arith.truncf %200 : vector<8x128xf32> to vector<8x128xbf16>
    %cst_41 = arith.constant dense<0.000000e+00> : vector<8x384xf32>
    %205 = tpu.matmul %204, %0, %cst_41 {dimension_numbers = #tpu.dot_dimension_numbers<[1], [0], [0], [1], [0, 0, 1, 1], [], []>} : vector<8x128xbf16>, vector<128x384xbf16>, vector<8x384xf32> -> vector<8x384xf32>
    %206 = vector.broadcast %1 : vector<1x384xf32> to vector<8x384xf32>
    %207 = arith.addf %205, %206 : vector<8x384xf32>
    %208 = vector.extract_strided_slice %203 {offsets = [0, 0], sizes = [8, 128], strides = [1, 1]} : vector<8x384xf32> to vector<8x128xf32>
    %209 = vector.extract_strided_slice %207 {offsets = [0, 0], sizes = [8, 128], strides = [1, 1]} : vector<8x384xf32> to vector<8x128xf32>
    %210 = arith.addf %208, %209 : vector<8x128xf32>
    %211 = arith.negf %210 : vector<8x128xf32>
    %212 = math.exp %211 : vector<8x128xf32>
    %cst_42 = arith.constant 1.000000e+00 : f32
    %213 = vector.broadcast %cst_42 : f32 to vector<8x128xf32>
    %214 = arith.addf %213, %212 : vector<8x128xf32>
    %215 = arith.divf %213, %214 : vector<8x128xf32>
    %216 = vector.extract_strided_slice %203 {offsets = [0, 128], sizes = [8, 128], strides = [1, 1]} : vector<8x384xf32> to vector<8x128xf32>
    %217 = vector.extract_strided_slice %207 {offsets = [0, 128], sizes = [8, 128], strides = [1, 1]} : vector<8x384xf32> to vector<8x128xf32>
    %218 = arith.addf %216, %217 : vector<8x128xf32>
    %219 = arith.negf %218 : vector<8x128xf32>
    %220 = math.exp %219 : vector<8x128xf32>
    %cst_43 = arith.constant 1.000000e+00 : f32
    %221 = vector.broadcast %cst_43 : f32 to vector<8x128xf32>
    %222 = arith.addf %221, %220 : vector<8x128xf32>
    %223 = arith.divf %221, %222 : vector<8x128xf32>
    %224 = vector.extract_strided_slice %203 {offsets = [0, 256], sizes = [8, 128], strides = [1, 1]} : vector<8x384xf32> to vector<8x128xf32>
    %225 = vector.extract_strided_slice %207 {offsets = [0, 256], sizes = [8, 128], strides = [1, 1]} : vector<8x384xf32> to vector<8x128xf32>
    %226 = arith.mulf %215, %225 : vector<8x128xf32>
    %227 = arith.addf %224, %226 : vector<8x128xf32>
    %228 = math.tanh %227 : vector<8x128xf32>
    %cst_44 = arith.constant 1.000000e+00 : f32
    %229 = vector.broadcast %cst_44 : f32 to vector<8x128xf32>
    %230 = arith.subf %229, %223 : vector<8x128xf32>
    %231 = arith.mulf %230, %228 : vector<8x128xf32>
    %232 = arith.mulf %223, %200 : vector<8x128xf32>
    %233 = arith.addf %231, %232 : vector<8x128xf32>
    %c7_i32 = arith.constant 7 : i32
    %234 = arith.index_cast %c7_i32 : i32 to index
    %c0_45 = arith.constant 0 : index
    %c0_46 = arith.constant 0 : index
    %235 = vector.load %arg1[%234, %c0_45, %c0_46] : memref<8x8x384xf32, #tpu.memory_space<vmem>>, vector<1x8x384xf32>
    %236 = vector.shape_cast %235 : vector<1x8x384xf32> to vector<8x384xf32>
    %237 = arith.truncf %233 : vector<8x128xf32> to vector<8x128xbf16>
    %cst_47 = arith.constant dense<0.000000e+00> : vector<8x384xf32>
    %238 = tpu.matmul %237, %0, %cst_47 {dimension_numbers = #tpu.dot_dimension_numbers<[1], [0], [0], [1], [0, 0, 1, 1], [], []>} : vector<8x128xbf16>, vector<128x384xbf16>, vector<8x384xf32> -> vector<8x384xf32>
    %239 = vector.broadcast %1 : vector<1x384xf32> to vector<8x384xf32>
    %240 = arith.addf %238, %239 : vector<8x384xf32>
    %241 = vector.extract_strided_slice %236 {offsets = [0, 0], sizes = [8, 128], strides = [1, 1]} : vector<8x384xf32> to vector<8x128xf32>
    %242 = vector.extract_strided_slice %240 {offsets = [0, 0], sizes = [8, 128], strides = [1, 1]} : vector<8x384xf32> to vector<8x128xf32>
    %243 = arith.addf %241, %242 : vector<8x128xf32>
    %244 = arith.negf %243 : vector<8x128xf32>
    %245 = math.exp %244 : vector<8x128xf32>
    %cst_48 = arith.constant 1.000000e+00 : f32
    %246 = vector.broadcast %cst_48 : f32 to vector<8x128xf32>
    %247 = arith.addf %246, %245 : vector<8x128xf32>
    %248 = arith.divf %246, %247 : vector<8x128xf32>
    %249 = vector.extract_strided_slice %236 {offsets = [0, 128], sizes = [8, 128], strides = [1, 1]} : vector<8x384xf32> to vector<8x128xf32>
    %250 = vector.extract_strided_slice %240 {offsets = [0, 128], sizes = [8, 128], strides = [1, 1]} : vector<8x384xf32> to vector<8x128xf32>
    %251 = arith.addf %249, %250 : vector<8x128xf32>
    %252 = arith.negf %251 : vector<8x128xf32>
    %253 = math.exp %252 : vector<8x128xf32>
    %cst_49 = arith.constant 1.000000e+00 : f32
    %254 = vector.broadcast %cst_49 : f32 to vector<8x128xf32>
    %255 = arith.addf %254, %253 : vector<8x128xf32>
    %256 = arith.divf %254, %255 : vector<8x128xf32>
    %257 = vector.extract_strided_slice %236 {offsets = [0, 256], sizes = [8, 128], strides = [1, 1]} : vector<8x384xf32> to vector<8x128xf32>
    %258 = vector.extract_strided_slice %240 {offsets = [0, 256], sizes = [8, 128], strides = [1, 1]} : vector<8x384xf32> to vector<8x128xf32>
    %259 = arith.mulf %248, %258 : vector<8x128xf32>
    %260 = arith.addf %257, %259 : vector<8x128xf32>
    %261 = math.tanh %260 : vector<8x128xf32>
    %cst_50 = arith.constant 1.000000e+00 : f32
    %262 = vector.broadcast %cst_50 : f32 to vector<8x128xf32>
    %263 = arith.subf %262, %256 : vector<8x128xf32>
    %264 = arith.mulf %263, %261 : vector<8x128xf32>
    %265 = arith.mulf %256, %233 : vector<8x128xf32>
    %266 = arith.addf %264, %265 : vector<8x128xf32>
    %c8_i32 = arith.constant 8 : i32
    %c0_51 = arith.constant 0 : index
    %c0_52 = arith.constant 0 : index
    %267 = vector.load %arg4[%c0_51, %c0_52] : memref<8x128xf32, #tpu.memory_space<vmem>>, vector<8x128xf32>
    tpu.vector_store %arg4[%c0_51, %c0_52], %266 {strides = array<i32>} : memref<8x128xf32, #tpu.memory_space<vmem>>, vector<8x128xf32>,
    return
  }
  func.func @transform_0(%arg0: i32) -> (i32, i32, i32) {
    %c0_i32 = arith.constant 0 : i32
    %c0_i32_0 = arith.constant 0 : i32
    %c0_i32_1 = arith.constant 0 : i32
    return %c0_i32, %arg0, %c0_i32_0 : i32, i32, i32
  }
  func.func @transform_1(%arg0: i32) -> (i32, i32) {
    %c0_i32 = arith.constant 0 : i32
    %c0_i32_0 = arith.constant 0 : i32
    %c0_i32_1 = arith.constant 0 : i32
    return %c0_i32, %c0_i32_0 : i32, i32
  }
  func.func @transform_2(%arg0: i32) -> (i32, i32) {
    %c0_i32 = arith.constant 0 : i32
    %c0_i32_0 = arith.constant 0 : i32
    %c0_i32_1 = arith.constant 0 : i32
    return %c0_i32, %c0_i32_0 : i32, i32
  }
  func.func @transform_3(%arg0: i32) -> (i32, i32) {
    %c0_i32 = arith.constant 0 : i32
    %c0_i32_0 = arith.constant 0 : i32
    return %arg0, %c0_i32 : i32, i32
  }
}

</mosaic_0001>

<bundles_post_ra>
// kernel: tpu_custom_call.1
= control target key start
LH: loop header
LB: loop body
LE: loop exit
PB: predicated region body
PF: predicated region fallthrough
CT: control target
= control target key end

     0   :  { %8 = vsyncpa [#allocation3], 0  ;;  %s1984_s0 = inlined_call_operand.hbm [shape: f32[8,8,384], index: 0, kind: input, shape index: {}]   ;;  %s1985_s1 = inlined_call_operand.hbm [shape: bf16[128,384], index: 1, kind: input, shape index: {}]   ;;  %s1986_s2 = inlined_call_operand.vmem [shape: f32[1,384], index: 2, kind: input, shape index: {}]   ;;  %s1987_s3 = inlined_call_operand.hbm [shape: f32[8,128], index: 3, kind: output, shape index: {}]  }
   0x1   :  { %9 = vsyncpa [#allocation6], 0 }
   0x2   :  { %10 = vsyncpa [#allocation4], 0  ;;  %s1560_s12 = smov [#allocation2]  }
   0x3   :  { %s16_s13 = sshll.u32 %s1560_s12, 4  ;;  %s17_s13 = int_to_ptr.vmem [resolvable:$true] %s16_s13 }
   0x4   :  { %s1502_s14 = scalar_lea.vmem %s17_s13, 3072  ;;  %p1507_p1 = scmp.lt.s32.totalorder %s17_s13, %s17_s13 }
   0x5   :  { %p1503_p0 = scmp.ne.s32.totalorder %s17_s13, %s1502_s14  ;;  %p1508_p2 = scmp.lt.s32.totalorder %s1502_s14, %s1502_s14 }
   0x7   :  { %p1509_p3 = por %p1508_p2, %p1507_p1 }
   0x9   :  { %p1510_p4 = pnand %p1509_p3, %p1503_p0 }
   0xb   :  { %1513 = shalt.err (!%p1510_p4)
}
   0xc   :  { %s1561_s15 = smov 384   ;;  %s1562_s16 = smov 24  }
   0xd   :  { %22 = dma.hbm_to_vmem [thread:$0]  %s1984_s0, 3072, %s17_s13, [#allocation3], %s1561_s15, %s1561_s15, %s1562_s16  }
   0xe   :  { %s1563_s19 = smov [#allocation5]  }
   0xf   :  { %s28_s20 = sshll.u32 %s1563_s19, 4  ;;  %s29_s20 = int_to_ptr.vmem [resolvable:$true] %s28_s20 }
  0x10   :  { %s1522_s21 = scalar_lea.vmem %s29_s20, 3072  ;;  %p1527_p6 = scmp.lt.s32.totalorder %s29_s20, %s29_s20 }
  0x11   :  { %p1523_p5 = scmp.ne.s32.totalorder %s29_s20, %s1522_s21  ;;  %p1528_p7 = scmp.lt.s32.totalorder %s1522_s21, %s1522_s21 }
  0x13   :  { %p1529_p8 = por %p1528_p7, %p1527_p6 }
  0x15   :  { %p1530_p9 = pnand %p1529_p8, %p1523_p5 }
  0x17   :  { %1533 = shalt.err (!%p1530_p9)
}
  0x18   :  { %s1564_s22 = smov 192   ;;  %s1565_s23 = smov 12  }
  0x19   :  { %34 = dma.hbm_to_vmem [thread:$0]  %s1985_s1, 3072, %s29_s20, [#allocation6], %s1564_s22, %s1564_s22, %s1565_s23  }
  0x1a   :  { %1554 = dma.done.wait [#allocation3], 3072  }
  0x1b   :  { %1555 = vsyncadd [#allocation3], 4294964224 }
  0x1c   :  { %1556 = dma.done.wait [#allocation6], 3072  }
  0x1d   :  { %1557 = vsyncadd [#allocation6], 4294964224  ;;  %v1566_v0 = vmov 0.0   ;;  %v1567_v1 = vmov 0   ;;  %vm1568_vm0 = vmmov 0   ;;  %v81_v26 = vlaneseq  ;;  %v77_v32 = vld [vmem:[#allocation2] sm:$0xff] }
  0x1e   :  { %1204 = vmatprep.subr.bf16.mxu1 %v1566_v0  ;;  %256 = vmatprep.mubr.bf16.mxu0 %v1567_v1  ;;  %v1600_v2 = vld [vmem:[#allocation5 + $0xac] ss:$12 sps:$4 sm:$0xff]   ;;  %v1602_v3 = vld [vmem:[#allocation5 + $0xa8] ss:$12 sps:$4 sm:$0xff]   ;;  %v1608_v5 = vld [vmem:[#allocation5 + $0x90] ss:$12 sps:$4 sm:$0xff]  }
  0x1f   :  { %1220 = vmatprep.mubr.msk.bf16.mxu1 %vm1568_vm0, %v1566_v0  ;;  %224 = vmatprep.subr.bf16.mxu0 %v1600_v2  ;;  %v1605_v4 = vld [vmem:[#allocation5 + $0x94] ss:$12 sps:$4 sm:$0xff]   ;;  %v1611_v6 = vld [vmem:[#allocation5 + $0x7c] ss:$12 sps:$4 sm:$0xff]   ;;  %v1614_v7 = vld [vmem:[#allocation5 + $0x78] ss:$12 sps:$4 sm:$0xff]  }
  0x20   :  { %225 = vmatpush1.bf16.msra.mxu0 %v1602_v3  ;;  %v1617_v8 = vld [vmem:[#allocation5 + $0x64] ss:$12 sps:$4 sm:$0xff]   ;;  %v1619_v9 = vld [vmem:[#allocation5 + $0x60] ss:$12 sps:$4 sm:$0xff]   ;;  %v1632_v13 = vld [vmem:[#allocation5 + $0x48] ss:$12 sps:$4 sm:$0xff]  }
  0x21   :  { %226 = vmatprep.subr.bf16.mxu0 %v1605_v4  ;;  %v1622_v10 = vld [vmem:[#allocation5 + $0xb0] ss:$12 sps:$4 sm:$0xff]   ;;  %v1625_v11 = vld [vmem:[#allocation5 + $0x4c] ss:$12 sps:$4 sm:$0xff]   ;;  %v1635_v14 = vld [vmem:[#allocation5 + $0x34] ss:$12 sps:$4 sm:$0xff]  }
  0x22   :  { %1205 = vmatpush3.bf16.msra.mxu1 %v1622_v10  ;;  %v1628_v12 = vld [vmem:[#allocation5 + $0x98] ss:$12 sps:$4 sm:$0xff]   ;;  %v1638_v15 = vld [vmem:[#allocation5 + $0x80] ss:$12 sps:$4 sm:$0xff]   ;;  %v1642_v16 = vld [vmem:[#allocation5 + $0x30] ss:$12 sps:$4 sm:$0xff]  }
  0x23   :  { %1206 = vmatprep.subr.bf16.mxu1 %v1566_v0  ;;  %v1645_v17 = vld [vmem:[#allocation5 + $0x1c] ss:$12 sps:$4 sm:$0xff]   ;;  %v1652_v19 = vld [vmem:[#allocation5 + $0x18] ss:$12 sps:$4 sm:$0xff]   ;;  %v1662_v22 = vld [vmem:[#allocation5] ss:$12 sps:$4 sm:$0xff]  }
  0x24   :  { %227 = vmatpush1.bf16.msra.mxu0 %v1608_v5  ;;  %v1648_v18 = vld [vmem:[#allocation5 + $0x68] ss:$12 sps:$4 sm:$0xff]   ;;  %v1655_v20 = vld [vmem:[#allocation5 + $0x4] ss:$12 sps:$4 sm:$0xff]   ;;  %v1672_v24 = vld [vmem:[#allocation5 + $0x20] ss:$12 sps:$4 sm:$0xff]  }
  0x25   :  { %228 = vmatprep.subr.bf16.mxu0 %v1611_v6  ;;  %v1658_v21 = vld [vmem:[#allocation5 + $0x50] ss:$12 sps:$4 sm:$0xff]   ;;  %v1666_v23 = vld [vmem:[#allocation5 + $0x38] ss:$12 sps:$4 sm:$0xff]   ;;  %v1680_v25 = vld [vmem:[#allocation5 + $0x8] ss:$12 sps:$4 sm:$0xff]  }
  0x26   :  { %1207 = vmatpush3.bf16.msra.mxu1 %v1628_v12  ;;  %v82_v27 = vshrl.u32 %v81_v26, 7  ;;  %v76_v29 = vld [vmem:[%s1986_s2] sm:$0x7]  ;;  %v78_v41 = vld [vmem:[#allocation2 + $0x8] sm:$0xff]  ;;  %v79_v57 = vld [vmem:[#allocation2 + $0x10] sm:$0xff]  ;;  %s1569_s2 = smov [#allocation7]  }
  0x27   :  { %1208 = vmatprep.subr.bf16.mxu1 %v1566_v0  ;;  %s1082_s26 = sshll.u32 %s1569_s2, 4  ;;  %s1083_s26 = int_to_ptr.vmem [resolvable:$true] %s1082_s26 }
  0x28   :  { %229 = vmatpush1.bf16.msra.mxu0 %v1614_v7  ;;  %v83_v28 = vsub.s32 0, %v82_v27  ;;  %v87_v31 = vsub.s32 1, %v82_v27  ;;  %v91_v51 = vsub.s32 2, %v82_v27  ;;  %s1534_s27 = scalar_lea.vmem %s1083_s26, 128  ;;  %p1539_p11 = scmp.lt.s32.totalorder %s1083_s26, %s1083_s26 }
  0x29   :  { %230 = vmatprep.subr.bf16.mxu0 %v1617_v8  ;;  %p1535_p10 = scmp.ne.s32.totalorder %s1083_s26, %s1534_s27  ;;  %p1540_p12 = scmp.lt.s32.totalorder %s1534_s27, %s1534_s27 }
  0x2a   :  { %1209 = vmatpush3.bf16.msra.mxu1 %v1638_v15  ;;  %v1721_v30 = vrot.slane %v76_v29, %v83_v28  ;;  %v1724_v35 = vrot.slane %v76_v29, %v87_v31  ;;  %v1727_v52 = vrot.slane %v76_v29, %v91_v51  ;;  %v327_v29 = vld [vmem:[#allocation2 + $0x18] sm:$0xff] }
  0x2b   :  { %1210 = vmatprep.subr.bf16.mxu1 %v1566_v0  ;;  %p1541_p13 = por %p1540_p12, %p1539_p11 }
  0x2c   :  { %231 = vmatpush1.bf16.msra.mxu0 %v1619_v9 }
  0x2d   :  { %232 = vmatprep.subr.bf16.mxu0 %v1625_v11  ;;  %p1542_p0 = pnand %p1541_p13, %p1535_p10 }
  0x2e   :  { %1211 = vmatpush3.bf16.msra.mxu1 %v1648_v18 }
  0x2f   :  { %1212 = vmatprep.subr.bf16.mxu1 %v1566_v0 }
  0x30   :  { %233 = vmatpush1.bf16.msra.mxu0 %v1632_v13 }
  0x31   :  { %234 = vmatprep.subr.bf16.mxu0 %v1635_v14 }
  0x32   :  { %1213 = vmatpush3.bf16.msra.mxu1 %v1658_v21 }
  0x33   :  { %1214 = vmatprep.subr.bf16.mxu1 %v1566_v0 }
  0x34   :  { %235 = vmatpush1.bf16.msra.mxu0 %v1642_v16 }
  0x35   :  { %236 = vmatprep.subr.bf16.mxu0 %v1645_v17 }
  0x36   :  { %1215 = vmatpush3.bf16.msra.mxu1 %v1666_v23 }
  0x37   :  { %1216 = vmatprep.subr.bf16.mxu1 %v1566_v0 }
  0x38   :  { %237 = vmatpush1.bf16.msra.mxu0 %v1652_v19 }
  0x39   :  { %238 = vmatprep.subr.bf16.mxu0 %v1655_v20 }
  0x3a   :  { %1217 = vmatpush3.bf16.msra.mxu1 %v1672_v24 }
  0x3b   :  { %1218 = vmatprep.subr.bf16.mxu1 %v1566_v0 }
  0x3c   :  { %239 = vmatpush1.bf16.msra.mxu0 %v1662_v22 }
  0x3d   :  { %331 = vmatprep.subr.bf16.mxu0 %v1600_v2 }
  0x3e   :  { %1219 = vmatpush3.bf16.msra.mxu1 %v1680_v25 }
  0x3f   :  { %257 = vmatmul.mubr.bf16.vlgmr.msra.gmra.mxu0 %v1567_v1  ;;  %1224 = vmatprep.subr.bf16.mxu1 %v1566_v0 }
  0x40   :  { %332 = vmatpush1.bf16.msra.mxu0 %v1602_v3  ;;  %363 = vmatprep.mubr.bf16.mxu0 %v1567_v1 }
  0x41   :  { %333 = vmatprep.subr.bf16.mxu0 %v1605_v4  ;;  %1221 = vmatmul.mubr.bf16.vlgmr.msra.gmra.mxu1 %v1567_v1 }
  0x42   :  { %1225 = vmatpush3.bf16.msra.mxu1 %v1622_v10  ;;  %1240 = vmatprep.mubr.msk.bf16.mxu1 %vm1568_vm0, %v1566_v0 }
  0x43   :  { %1226 = vmatprep.subr.bf16.mxu1 %v1566_v0 }
  0x44   :  { %334 = vmatpush1.bf16.msra.mxu0 %v1608_v5 }
  0x45   :  { %335 = vmatprep.subr.bf16.mxu0 %v1611_v6 }
  0x46   :  { %1227 = vmatpush3.bf16.msra.mxu1 %v1628_v12 }
  0x47   :  { %1228 = vmatprep.subr.bf16.mxu1 %v1566_v0 }
  0x48   :  { %336 = vmatpush1.bf16.msra.mxu0 %v1614_v7 }
  0x49   :  { %337 = vmatprep.subr.bf16.mxu0 %v1617_v8 }
  0x4a   :  { %1229 = vmatpush3.bf16.msra.mxu1 %v1638_v15 }
  0x4b   :  { %1230 = vmatprep.subr.bf16.mxu1 %v1566_v0 }
  0x4c   :  { %338 = vmatpush1.bf16.msra.mxu0 %v1619_v9 }
  0x4d   :  { %339 = vmatprep.subr.bf16.mxu0 %v1625_v11 }
  0x4e   :  { %1231 = vmatpush3.bf16.msra.mxu1 %v1648_v18 }
  0x4f   :  { %1232 = vmatprep.subr.bf16.mxu1 %v1566_v0 }
  0x50   :  { %340 = vmatpush1.bf16.msra.mxu0 %v1632_v13 }
  0x51   :  { %341 = vmatprep.subr.bf16.mxu0 %v1635_v14 }
  0x52   :  { %1233 = vmatpush3.bf16.msra.mxu1 %v1658_v21 }
  0x53   :  { %1234 = vmatprep.subr.bf16.mxu1 %v1566_v0 }
  0x54   :  { %342 = vmatpush1.bf16.msra.mxu0 %v1642_v16 }
  0x55   :  { %343 = vmatprep.subr.bf16.mxu0 %v1645_v17 }
  0x56   :  { %1235 = vmatpush3.bf16.msra.mxu1 %v1666_v23 }
  0x57   :  { %1236 = vmatprep.subr.bf16.mxu1 %v1566_v0 }
  0x58   :  { %344 = vmatpush1.bf16.msra.mxu0 %v1652_v19 }
  0x59   :  { %345 = vmatprep.subr.bf16.mxu0 %v1655_v20 }
  0x5a   :  { %1237 = vmatpush3.bf16.msra.mxu1 %v1672_v24 }
  0x5b   :  { %1238 = vmatprep.subr.bf16.mxu1 %v1566_v0 }
  0x5c   :  { %346 = vmatpush1.bf16.msra.mxu0 %v1662_v22 }
  0x5d   :  { %438 = vmatprep.subr.bf16.mxu0 %v1600_v2 }
  0x5e   :  { %1239 = vmatpush3.bf16.msra.mxu1 %v1680_v25 }
  0x5f   :  { %1244 = vmatprep.subr.bf16.mxu1 %v1566_v0 }
  0xff   :  { %v258_v33 = vpop.f32.mrf.mxu0 }
 0x100   :  { %v259_v34 = vadd.f32 %v258_v33, %v1721_v30 }
 0x101   :  { %v260_v36 = vpop.f32.mrf.mxu0  ;;  %v299_v44 = vpop.f32.mrf.mxu1 }
 0x102   :  { %v305_v37 = vadd.f32 %v259_v34, %v77_v32  ;;  %v261_v40 = vadd.f32 %v260_v36, %v1724_v35  ;;  %v300_v55 = vadd.f32 %v299_v44, %v1727_v52 }
 0x103   :  { %v262_v38 = vpop.f32.mrf.mxu0  ;;  %v1222_v45 = vpop.f32.mrf.mxu1 }
 0x104   :  { %v1116_v39 = vmul.f32 -1.442695, %v305_v37  ;;  %v312_v43 = vadd.f32 %v261_v40, %v78_v41 }
 0x105   :  { %v263_v42 = vpop.f32.mrf.mxu0  ;;  %v302_v47 = vpop.f32.mrf.mxu1 }
 0x106   :  { %1406 = vpow2.f32 %v1116_v39  ;;  %v1117_v46 = vmul.f32 -1.442695, %v312_v43  ;;  %v328_v42 = vld [vmem:[#allocation2 + $0x20] sm:$0xff] }
 0x107   :  { %v1223_v48 = vpop.f32.mrf.mxu1 }
 0x108   :  { %1408 = vpow2.f32 %v1117_v46 }
 0x113   :  { %v1407_v49 = vpop.eup %1406 }
 0x114   :  { %v309_v50 = vadd.f32 1.0, %v1407_v49 }
 0x115   :  { %v1409_v53 = vpop.eup %1408 }
 0x116   :  { %1410 = vrcp.f32 %v309_v50  ;;  %v316_v54 = vadd.f32 1.0, %v1409_v53 }
 0x118   :  { %1412 = vrcp.f32 %v316_v54  ;;  %v329_v54 = vld [vmem:[#allocation2 + $0x28] sm:$0xff] }
 0x123   :  { %v1411_v56 = vpop.eup %1410 }
 0x124   :  { %v319_v58 = vmul.f32 %v1411_v56, %v300_v55 }
 0x125   :  { %v1413_v60 = vpop.eup %1412 }
 0x126   :  { %v320_v59 = vadd.f32 %v319_v58, %v79_v57  ;;  %v322_v61 = vsub.f32 1.0, %v1413_v60  ;;  %v324_v26 = vmul.f32 0.0, %v1413_v60 }
 0x128   :  { %1414 = vtanh.f32 %v320_v59 }
 0x135   :  { %v1415_v62 = vpop.eup %1414 }
 0x136   :  { %v323_v63 = vmul.f32 %v1415_v62, %v322_v61 }
 0x138   :  { %v1730_v28 = vadd.f32 %v324_v26, %v323_v63  ;;  %v434_v26 = vld [vmem:[#allocation2 + $0x30] sm:$0xff] }
 0x13a   :  { %v330_v27 = vpack.c.bf16 %v1730_v28, %v1730_v28 }
 0x13c   :  { %364 = vmatmul.mubr.bf16.vlgmr.msra.gmra.mxu0 %v330_v27  ;;  %1241 = vmatmul.mubr.bf16.vlgmr.msra.gmra.mxu1 %v330_v27 }
 0x13d   :  { %439 = vmatpush1.bf16.msra.mxu0 %v1602_v3  ;;  %1245 = vmatpush3.bf16.msra.mxu1 %v1622_v10 }
 0x13e   :  { %440 = vmatprep.subr.bf16.mxu0 %v1605_v4  ;;  %1246 = vmatprep.subr.bf16.mxu1 %v1566_v0 }
 0x13f   :  { %470 = vmatprep.mubr.bf16.mxu0 %v1567_v1  ;;  %1260 = vmatprep.mubr.msk.bf16.mxu1 %vm1568_vm0, %v1566_v0 }
 0x141   :  { %441 = vmatpush1.bf16.msra.mxu0 %v1608_v5  ;;  %1247 = vmatpush3.bf16.msra.mxu1 %v1628_v12 }
 0x142   :  { %442 = vmatprep.subr.bf16.mxu0 %v1611_v6  ;;  %1248 = vmatprep.subr.bf16.mxu1 %v1566_v0 }
 0x145   :  { %443 = vmatpush1.bf16.msra.mxu0 %v1614_v7  ;;  %1249 = vmatpush3.bf16.msra.mxu1 %v1638_v15 }
 0x146   :  { %444 = vmatprep.subr.bf16.mxu0 %v1617_v8  ;;  %1250 = vmatprep.subr.bf16.mxu1 %v1566_v0 }
 0x149   :  { %445 = vmatpush1.bf16.msra.mxu0 %v1619_v9  ;;  %1251 = vmatpush3.bf16.msra.mxu1 %v1648_v18 }
 0x14a   :  { %446 = vmatprep.subr.bf16.mxu0 %v1625_v11  ;;  %1252 = vmatprep.subr.bf16.mxu1 %v1566_v0 }
 0x14d   :  { %447 = vmatpush1.bf16.msra.mxu0 %v1632_v13  ;;  %1253 = vmatpush3.bf16.msra.mxu1 %v1658_v21 }
 0x14e   :  { %448 = vmatprep.subr.bf16.mxu0 %v1635_v14  ;;  %1254 = vmatprep.subr.bf16.mxu1 %v1566_v0 }
 0x151   :  { %449 = vmatpush1.bf16.msra.mxu0 %v1642_v16  ;;  %1255 = vmatpush3.bf16.msra.mxu1 %v1666_v23 }
 0x152   :  { %450 = vmatprep.subr.bf16.mxu0 %v1645_v17  ;;  %1256 = vmatprep.subr.bf16.mxu1 %v1566_v0 }
 0x155   :  { %451 = vmatpush1.bf16.msra.mxu0 %v1652_v19  ;;  %1257 = vmatpush3.bf16.msra.mxu1 %v1672_v24 }
 0x156   :  { %452 = vmatprep.subr.bf16.mxu0 %v1655_v20  ;;  %1258 = vmatprep.subr.bf16.mxu1 %v1566_v0 }
 0x159   :  { %453 = vmatpush1.bf16.msra.mxu0 %v1662_v22  ;;  %1259 = vmatpush3.bf16.msra.mxu1 %v1680_v25 }
 0x15a   :  { %545 = vmatprep.subr.bf16.mxu0 %v1600_v2  ;;  %1264 = vmatprep.subr.bf16.mxu1 %v1566_v0 }
 0x1fc   :  { %v365_v31 = vpop.f32.mrf.mxu0  ;;  %v406_v32 = vpop.f32.mrf.mxu1 }
 0x1fd   :  { %v366_v33 = vadd.f32 %v365_v31, %v1721_v30  ;;  %v407_v51 = vadd.f32 %v406_v32, %v1727_v52 }
 0x1fe   :  { %v367_v34 = vpop.f32.mrf.mxu0  ;;  %v1242_v36 = vpop.f32.mrf.mxu1 }
 0x1ff   :  { %v412_v37 = vadd.f32 %v366_v33, %v327_v29  ;;  %v368_v41 = vadd.f32 %v367_v34, %v1724_v35 }
 0x200   :  { %v369_v38 = vpop.f32.mrf.mxu0  ;;  %v409_v39 = vpop.f32.mrf.mxu1 }
 0x201   :  { %v1118_v40 = vmul.f32 -1.442695, %v412_v37  ;;  %v419_v45 = vadd.f32 %v368_v41, %v328_v42  ;;  %v435_v39 = vld [vmem:[#allocation2 + $0x38] sm:$0xff] }
 0x202   :  { %v370_v43 = vpop.f32.mrf.mxu0  ;;  %v1243_v44 = vpop.f32.mrf.mxu1 }
 0x203   :  { %1416 = vpow2.f32 %v1118_v40  ;;  %v1119_v46 = vmul.f32 -1.442695, %v419_v45 }
 0x205   :  { %1418 = vpow2.f32 %v1119_v46 }
 0x210   :  { %v1417_v47 = vpop.eup %1416 }
 0x211   :  { %v416_v48 = vadd.f32 1.0, %v1417_v47 }
 0x212   :  { %v1419_v49 = vpop.eup %1418 }
 0x213   :  { %1420 = vrcp.f32 %v416_v48  ;;  %v423_v50 = vadd.f32 1.0, %v1419_v49 }
 0x215   :  { %1422 = vrcp.f32 %v423_v50  ;;  %v436_v50 = vld [vmem:[#allocation2 + $0x40] sm:$0xff] }
 0x220   :  { %v1421_v53 = vpop.eup %1420 }
 0x221   :  { %v426_v55 = vmul.f32 %v1421_v53, %v407_v51 }
 0x222   :  { %v1423_v57 = vpop.eup %1422 }
 0x223   :  { %v427_v56 = vadd.f32 %v426_v55, %v329_v54  ;;  %v429_v58 = vsub.f32 1.0, %v1423_v57  ;;  %v431_v61 = vmul.f32 %v1423_v57, %v1730_v28 }
 0x225   :  { %1424 = vtanh.f32 %v427_v56 }
 0x232   :  { %v1425_v59 = vpop.eup %1424 }
 0x233   :  { %v430_v60 = vmul.f32 %v1425_v59, %v429_v58 }
 0x235   :  { %v1773_v62 = vadd.f32 %v431_v61, %v430_v60  ;;  %v541_v61 = vld [vmem:[#allocation2 + $0x48] sm:$0xff] }
 0x237   :  { %v437_v63 = vpack.c.bf16 %v1773_v62, %v1773_v62 }
 0x239   :  { %471 = vmatmul.mubr.bf16.vlgmr.msra.gmra.mxu0 %v437_v63  ;;  %1261 = vmatmul.mubr.bf16.vlgmr.msra.gmra.mxu1 %v437_v63 }
 0x23a   :  { %546 = vmatpush1.bf16.msra.mxu0 %v1602_v3  ;;  %1265 = vmatpush3.bf16.msra.mxu1 %v1622_v10 }
 0x23b   :  { %547 = vmatprep.subr.bf16.mxu0 %v1605_v4  ;;  %1266 = vmatprep.subr.bf16.mxu1 %v1566_v0 }
 0x23c   :  { %577 = vmatprep.mubr.bf16.mxu0 %v1567_v1  ;;  %1280 = vmatprep.mubr.msk.bf16.mxu1 %vm1568_vm0, %v1566_v0 }
 0x23e   :  { %548 = vmatpush1.bf16.msra.mxu0 %v1608_v5  ;;  %1267 = vmatpush3.bf16.msra.mxu1 %v1628_v12 }
 0x23f   :  { %549 = vmatprep.subr.bf16.mxu0 %v1611_v6  ;;  %1268 = vmatprep.subr.bf16.mxu1 %v1566_v0 }
 0x242   :  { %550 = vmatpush1.bf16.msra.mxu0 %v1614_v7  ;;  %1269 = vmatpush3.bf16.msra.mxu1 %v1638_v15 }
 0x243   :  { %551 = vmatprep.subr.bf16.mxu0 %v1617_v8  ;;  %1270 = vmatprep.subr.bf16.mxu1 %v1566_v0 }
 0x246   :  { %552 = vmatpush1.bf16.msra.mxu0 %v1619_v9  ;;  %1271 = vmatpush3.bf16.msra.mxu1 %v1648_v18 }
 0x247   :  { %553 = vmatprep.subr.bf16.mxu0 %v1625_v11  ;;  %1272 = vmatprep.subr.bf16.mxu1 %v1566_v0 }
 0x24a   :  { %554 = vmatpush1.bf16.msra.mxu0 %v1632_v13  ;;  %1273 = vmatpush3.bf16.msra.mxu1 %v1658_v21 }
 0x24b   :  { %555 = vmatprep.subr.bf16.mxu0 %v1635_v14  ;;  %1274 = vmatprep.subr.bf16.mxu1 %v1566_v0 }
 0x24e   :  { %556 = vmatpush1.bf16.msra.mxu0 %v1642_v16  ;;  %1275 = vmatpush3.bf16.msra.mxu1 %v1666_v23 }
 0x24f   :  { %557 = vmatprep.subr.bf16.mxu0 %v1645_v17  ;;  %1276 = vmatprep.subr.bf16.mxu1 %v1566_v0 }
 0x252   :  { %558 = vmatpush1.bf16.msra.mxu0 %v1652_v19  ;;  %1277 = vmatpush3.bf16.msra.mxu1 %v1672_v24 }
 0x253   :  { %559 = vmatprep.subr.bf16.mxu0 %v1655_v20  ;;  %1278 = vmatprep.subr.bf16.mxu1 %v1566_v0 }
 0x256   :  { %560 = vmatpush1.bf16.msra.mxu0 %v1662_v22  ;;  %1279 = vmatpush3.bf16.msra.mxu1 %v1680_v25 }
 0x257   :  { %652 = vmatprep.subr.bf16.mxu0 %v1600_v2  ;;  %1284 = vmatprep.subr.bf16.mxu1 %v1566_v0 }
 0x2f9   :  { %v472_v28 = vpop.f32.mrf.mxu0  ;;  %v513_v27 = vpop.f32.mrf.mxu1 }
 0x2fa   :  { %v473_v29 = vadd.f32 %v472_v28, %v1721_v30  ;;  %v514_v48 = vadd.f32 %v513_v27, %v1727_v52 }
 0x2fb   :  { %v474_v31 = vpop.f32.mrf.mxu0  ;;  %v1262_v32 = vpop.f32.mrf.mxu1 }
 0x2fc   :  { %v519_v33 = vadd.f32 %v473_v29, %v434_v26  ;;  %v475_v38 = vadd.f32 %v474_v31, %v1724_v35 }
 0x2fd   :  { %v476_v34 = vpop.f32.mrf.mxu0  ;;  %v516_v36 = vpop.f32.mrf.mxu1 }
 0x2fe   :  { %v1120_v37 = vmul.f32 -1.442695, %v519_v33  ;;  %v526_v42 = vadd.f32 %v475_v38, %v435_v39  ;;  %v542_v36 = vld [vmem:[#allocation2 + $0x50] sm:$0xff] }
 0x2ff   :  { %v477_v40 = vpop.f32.mrf.mxu0  ;;  %v1263_v41 = vpop.f32.mrf.mxu1 }
 0x300   :  { %1426 = vpow2.f32 %v1120_v37  ;;  %v1121_v43 = vmul.f32 -1.442695, %v526_v42 }
 0x302   :  { %1428 = vpow2.f32 %v1121_v43 }
 0x30d   :  { %v1427_v44 = vpop.eup %1426 }
 0x30e   :  { %v523_v45 = vadd.f32 1.0, %v1427_v44 }
 0x30f   :  { %v1429_v46 = vpop.eup %1428 }
 0x310   :  { %1430 = vrcp.f32 %v523_v45  ;;  %v530_v47 = vadd.f32 1.0, %v1429_v46 }
 0x312   :  { %1432 = vrcp.f32 %v530_v47  ;;  %v543_v47 = vld [vmem:[#allocation2 + $0x58] sm:$0xff] }
 0x31d   :  { %v1431_v49 = vpop.eup %1430 }
 0x31e   :  { %v533_v51 = vmul.f32 %v1431_v49, %v514_v48 }
 0x31f   :  { %v1433_v54 = vpop.eup %1432 }
 0x320   :  { %v534_v53 = vadd.f32 %v533_v51, %v436_v50  ;;  %v536_v55 = vsub.f32 1.0, %v1433_v54  ;;  %v538_v58 = vmul.f32 %v1433_v54, %v1773_v62 }
 0x322   :  { %1434 = vtanh.f32 %v534_v53 }
 0x32f   :  { %v1435_v56 = vpop.eup %1434 }
 0x330   :  { %v537_v57 = vmul.f32 %v1435_v56, %v536_v55 }
 0x332   :  { %v1816_v59 = vadd.f32 %v538_v58, %v537_v57  ;;  %v648_v58 = vld [vmem:[#allocation2 + $0x60] sm:$0xff] }
 0x334   :  { %v544_v60 = vpack.c.bf16 %v1816_v59, %v1816_v59 }
 0x336   :  { %578 = vmatmul.mubr.bf16.vlgmr.msra.gmra.mxu0 %v544_v60  ;;  %1281 = vmatmul.mubr.bf16.vlgmr.msra.gmra.mxu1 %v544_v60 }
 0x337   :  { %653 = vmatpush1.bf16.msra.mxu0 %v1602_v3  ;;  %1285 = vmatpush3.bf16.msra.mxu1 %v1622_v10 }
 0x338   :  { %654 = vmatprep.subr.bf16.mxu0 %v1605_v4  ;;  %1286 = vmatprep.subr.bf16.mxu1 %v1566_v0 }
 0x339   :  { %684 = vmatprep.mubr.bf16.mxu0 %v1567_v1  ;;  %1300 = vmatprep.mubr.msk.bf16.mxu1 %vm1568_vm0, %v1566_v0 }
 0x33b   :  { %655 = vmatpush1.bf16.msra.mxu0 %v1608_v5  ;;  %1287 = vmatpush3.bf16.msra.mxu1 %v1628_v12 }
 0x33c   :  { %656 = vmatprep.subr.bf16.mxu0 %v1611_v6  ;;  %1288 = vmatprep.subr.bf16.mxu1 %v1566_v0 }
 0x33f   :  { %657 = vmatpush1.bf16.msra.mxu0 %v1614_v7  ;;  %1289 = vmatpush3.bf16.msra.mxu1 %v1638_v15 }
 0x340   :  { %658 = vmatprep.subr.bf16.mxu0 %v1617_v8  ;;  %1290 = vmatprep.subr.bf16.mxu1 %v1566_v0 }
 0x343   :  { %659 = vmatpush1.bf16.msra.mxu0 %v1619_v9  ;;  %1291 = vmatpush3.bf16.msra.mxu1 %v1648_v18 }
 0x344   :  { %660 = vmatprep.subr.bf16.mxu0 %v1625_v11  ;;  %1292 = vmatprep.subr.bf16.mxu1 %v1566_v0 }
 0x347   :  { %661 = vmatpush1.bf16.msra.mxu0 %v1632_v13  ;;  %1293 = vmatpush3.bf16.msra.mxu1 %v1658_v21 }
 0x348   :  { %662 = vmatprep.subr.bf16.mxu0 %v1635_v14  ;;  %1294 = vmatprep.subr.bf16.mxu1 %v1566_v0 }
 0x34b   :  { %663 = vmatpush1.bf16.msra.mxu0 %v1642_v16  ;;  %1295 = vmatpush3.bf16.msra.mxu1 %v1666_v23 }
 0x34c   :  { %664 = vmatprep.subr.bf16.mxu0 %v1645_v17  ;;  %1296 = vmatprep.subr.bf16.mxu1 %v1566_v0 }
 0x34f   :  { %665 = vmatpush1.bf16.msra.mxu0 %v1652_v19  ;;  %1297 = vmatpush3.bf16.msra.mxu1 %v1672_v24 }
 0x350   :  { %666 = vmatprep.subr.bf16.mxu0 %v1655_v20  ;;  %1298 = vmatprep.subr.bf16.mxu1 %v1566_v0 }
 0x353   :  { %667 = vmatpush1.bf16.msra.mxu0 %v1662_v22  ;;  %1299 = vmatpush3.bf16.msra.mxu1 %v1680_v25 }
 0x354   :  { %759 = vmatprep.subr.bf16.mxu0 %v1600_v2  ;;  %1304 = vmatprep.subr.bf16.mxu1 %v1566_v0 }
 0x3f6   :  { %v579_v62 = vpop.f32.mrf.mxu0  ;;  %v620_v63 = vpop.f32.mrf.mxu1 }
 0x3f7   :  { %v580_v26 = vadd.f32 %v579_v62, %v1721_v30  ;;  %v621_v45 = vadd.f32 %v620_v63, %v1727_v52 }
 0x3f8   :  { %v581_v28 = vpop.f32.mrf.mxu0  ;;  %v1282_v27 = vpop.f32.mrf.mxu1 }
 0x3f9   :  { %v626_v29 = vadd.f32 %v580_v26, %v541_v61  ;;  %v582_v34 = vadd.f32 %v581_v28, %v1724_v35 }
 0x3fa   :  { %v583_v31 = vpop.f32.mrf.mxu0  ;;  %v623_v32 = vpop.f32.mrf.mxu1 }
 0x3fb   :  { %v1122_v33 = vmul.f32 -1.442695, %v626_v29  ;;  %v633_v39 = vadd.f32 %v582_v34, %v542_v36  ;;  %v649_v32 = vld [vmem:[#allocation2 + $0x68] sm:$0xff] }
 0x3fc   :  { %v584_v37 = vpop.f32.mrf.mxu0  ;;  %v1283_v38 = vpop.f32.mrf.mxu1 }
 0x3fd   :  { %1436 = vpow2.f32 %v1122_v33  ;;  %v1123_v40 = vmul.f32 -1.442695, %v633_v39 }
 0x3ff   :  { %1438 = vpow2.f32 %v1123_v40 }
 0x40a   :  { %v1437_v41 = vpop.eup %1436 }
 0x40b   :  { %v630_v42 = vadd.f32 1.0, %v1437_v41 }
 0x40c   :  { %v1439_v43 = vpop.eup %1438 }
 0x40d   :  { %1440 = vrcp.f32 %v630_v42  ;;  %v637_v44 = vadd.f32 1.0, %v1439_v43 }
 0x40f   :  { %1442 = vrcp.f32 %v637_v44  ;;  %v650_v44 = vld [vmem:[#allocation2 + $0x70] sm:$0xff] }
 0x41a   :  { %v1441_v46 = vpop.eup %1440 }
 0x41b   :  { %v640_v48 = vmul.f32 %v1441_v46, %v621_v45 }
 0x41c   :  { %v1443_v50 = vpop.eup %1442 }
 0x41d   :  { %v641_v49 = vadd.f32 %v640_v48, %v543_v47  ;;  %v643_v51 = vsub.f32 1.0, %v1443_v50  ;;  %v645_v55 = vmul.f32 %v1443_v50, %v1816_v59 }
 0x41f   :  { %1444 = vtanh.f32 %v641_v49 }
 0x42c   :  { %v1445_v53 = vpop.eup %1444 }
 0x42d   :  { %v644_v54 = vmul.f32 %v1445_v53, %v643_v51 }
 0x42f   :  { %v1859_v56 = vadd.f32 %v645_v55, %v644_v54 }
 0x431   :  { %v651_v57 = vpack.c.bf16 %v1859_v56, %v1859_v56 }
 0x433   :  { %685 = vmatmul.mubr.bf16.vlgmr.msra.gmra.mxu0 %v651_v57  ;;  %1301 = vmatmul.mubr.bf16.vlgmr.msra.gmra.mxu1 %v651_v57 }
 0x434   :  { %760 = vmatpush1.bf16.msra.mxu0 %v1602_v3  ;;  %1305 = vmatpush3.bf16.msra.mxu1 %v1622_v10 }
 0x435   :  { %761 = vmatprep.subr.bf16.mxu0 %v1605_v4  ;;  %1306 = vmatprep.subr.bf16.mxu1 %v1566_v0 }
 0x436   :  { %791 = vmatprep.mubr.bf16.mxu0 %v1567_v1  ;;  %1320 = vmatprep.mubr.msk.bf16.mxu1 %vm1568_vm0, %v1566_v0 }
 0x438   :  { %762 = vmatpush1.bf16.msra.mxu0 %v1608_v5  ;;  %1307 = vmatpush3.bf16.msra.mxu1 %v1628_v12 }
 0x439   :  { %763 = vmatprep.subr.bf16.mxu0 %v1611_v6  ;;  %1308 = vmatprep.subr.bf16.mxu1 %v1566_v0 }
 0x43c   :  { %764 = vmatpush1.bf16.msra.mxu0 %v1614_v7  ;;  %1309 = vmatpush3.bf16.msra.mxu1 %v1638_v15 }
 0x43d   :  { %765 = vmatprep.subr.bf16.mxu0 %v1617_v8  ;;  %1310 = vmatprep.subr.bf16.mxu1 %v1566_v0 }
 0x440   :  { %766 = vmatpush1.bf16.msra.mxu0 %v1619_v9  ;;  %1311 = vmatpush3.bf16.msra.mxu1 %v1648_v18 }
 0x441   :  { %767 = vmatprep.subr.bf16.mxu0 %v1625_v11  ;;  %1312 = vmatprep.subr.bf16.mxu1 %v1566_v0 }
 0x444   :  { %768 = vmatpush1.bf16.msra.mxu0 %v1632_v13  ;;  %1313 = vmatpush3.bf16.msra.mxu1 %v1658_v21 }
 0x445   :  { %769 = vmatprep.subr.bf16.mxu0 %v1635_v14  ;;  %1314 = vmatprep.subr.bf16.mxu1 %v1566_v0 }
 0x448   :  { %770 = vmatpush1.bf16.msra.mxu0 %v1642_v16  ;;  %1315 = vmatpush3.bf16.msra.mxu1 %v1666_v23 }
 0x449   :  { %771 = vmatprep.subr.bf16.mxu0 %v1645_v17  ;;  %1316 = vmatprep.subr.bf16.mxu1 %v1566_v0 }
 0x44c   :  { %772 = vmatpush1.bf16.msra.mxu0 %v1652_v19  ;;  %1317 = vmatpush3.bf16.msra.mxu1 %v1672_v24 }
 0x44d   :  { %773 = vmatprep.subr.bf16.mxu0 %v1655_v20  ;;  %1318 = vmatprep.subr.bf16.mxu1 %v1566_v0 }
 0x450   :  { %774 = vmatpush1.bf16.msra.mxu0 %v1662_v22  ;;  %1319 = vmatpush3.bf16.msra.mxu1 %v1680_v25 }
 0x451   :  { %866 = vmatprep.subr.bf16.mxu0 %v1600_v2  ;;  %1324 = vmatprep.subr.bf16.mxu1 %v1566_v0 }
 0x4f3   :  { %v686_v59 = vpop.f32.mrf.mxu0  ;;  %v727_v60 = vpop.f32.mrf.mxu1 }
 0x4f4   :  { %v687_v61 = vadd.f32 %v686_v59, %v1721_v30  ;;  %v728_v42 = vadd.f32 %v727_v60, %v1727_v52 }
 0x4f5   :  { %v688_v62 = vpop.f32.mrf.mxu0  ;;  %v1302_v63 = vpop.f32.mrf.mxu1 }
 0x4f6   :  { %v733_v26 = vadd.f32 %v687_v61, %v648_v58  ;;  %v689_v31 = vadd.f32 %v688_v62, %v1724_v35  ;;  %v756_v58 = vld [vmem:[#allocation2 + $0x80] sm:$0xff] }
 0x4f7   :  { %v690_v28 = vpop.f32.mrf.mxu0  ;;  %v730_v27 = vpop.f32.mrf.mxu1 }
 0x4f8   :  { %v1124_v29 = vmul.f32 -1.442695, %v733_v26  ;;  %v740_v36 = vadd.f32 %v689_v31, %v649_v32  ;;  %v757_v31 = vld [vmem:[#allocation2 + $0x88] sm:$0xff] }
 0x4f9   :  { %v691_v33 = vpop.f32.mrf.mxu0  ;;  %v1303_v34 = vpop.f32.mrf.mxu1 }
 0x4fa   :  { %1446 = vpow2.f32 %v1124_v29  ;;  %v1125_v37 = vmul.f32 -1.442695, %v740_v36 }
 0x4fc   :  { %1448 = vpow2.f32 %v1125_v37 }
 0x507   :  { %v1447_v38 = vpop.eup %1446 }
 0x508   :  { %v737_v39 = vadd.f32 1.0, %v1447_v38 }
 0x509   :  { %v1449_v40 = vpop.eup %1448 }
 0x50a   :  { %1450 = vrcp.f32 %v737_v39  ;;  %v744_v41 = vadd.f32 1.0, %v1449_v40 }
 0x50c   :  { %1452 = vrcp.f32 %v744_v41 }
 0x517   :  { %v1451_v43 = vpop.eup %1450 }
 0x518   :  { %v747_v45 = vmul.f32 %v1451_v43, %v728_v42  ;;  %v1486_v42 = vld [vmem:[#allocation5 + $0xa8] ss:$12 sps:$4 sm:$0xff]  }
 0x519   :  { %v1453_v47 = vpop.eup %1452  ;;  %v1487_v43 = vld [vmem:[#allocation5 + $0x94] ss:$12 sps:$4 sm:$0xff]  }
 0x51a   :  { %v748_v46 = vadd.f32 %v747_v45, %v650_v44  ;;  %v750_v48 = vsub.f32 1.0, %v1453_v47  ;;  %v752_v51 = vmul.f32 %v1453_v47, %v1859_v56  ;;  %v1488_v44 = vld [vmem:[#allocation5 + $0x90] ss:$12 sps:$4 sm:$0xff]   ;;  %v1493_v47 = vld [vmem:[#allocation5 + $0x4c] ss:$12 sps:$4 sm:$0xff]  }
 0x51b   :  { %v1489_v45 = vld [vmem:[#allocation5 + $0x7c] ss:$12 sps:$4 sm:$0xff]  }
 0x51c   :  { %1454 = vtanh.f32 %v748_v46  ;;  %v1490_v46 = vld [vmem:[#allocation5 + $0x78] ss:$12 sps:$4 sm:$0xff]  }
 0x529   :  { %v1455_v49 = vpop.eup %1454 }
 0x52a   :  { %v751_v50 = vmul.f32 %v1455_v49, %v750_v48 }
 0x52c   :  { %v1902_v53 = vadd.f32 %v752_v51, %v751_v50 }
 0x52e   :  { %v758_v54 = vpack.c.bf16 %v1902_v53, %v1902_v53 }
 0x530   :  { %792 = vmatmul.mubr.bf16.vlgmr.msra.gmra.mxu0 %v758_v54  ;;  %1321 = vmatmul.mubr.bf16.vlgmr.msra.gmra.mxu1 %v758_v54 }
 0x531   :  { %867 = vmatpush1.bf16.msra.mxu0 %v1602_v3  ;;  %1325 = vmatpush3.bf16.msra.mxu1 %v1622_v10  ;;  %v755_v3 = vld [vmem:[#allocation2 + $0x78] sm:$0xff] }
 0x532   :  { %868 = vmatprep.subr.bf16.mxu0 %v1605_v4  ;;  %1326 = vmatprep.subr.bf16.mxu1 %v1566_v0 }
 0x533   :  { %898 = vmatprep.mubr.bf16.mxu0 %v1567_v1  ;;  %1340 = vmatprep.mubr.msk.bf16.mxu1 %vm1568_vm0, %v1566_v0 }
 0x535   :  { %869 = vmatpush1.bf16.msra.mxu0 %v1608_v5  ;;  %1327 = vmatpush3.bf16.msra.mxu1 %v1628_v12 }
 0x536   :  { %870 = vmatprep.subr.bf16.mxu0 %v1611_v6  ;;  %1328 = vmatprep.subr.bf16.mxu1 %v1566_v0 }
 0x539   :  { %871 = vmatpush1.bf16.msra.mxu0 %v1614_v7  ;;  %1329 = vmatpush3.bf16.msra.mxu1 %v1638_v15 }
 0x53a   :  { %872 = vmatprep.subr.bf16.mxu0 %v1617_v8  ;;  %1330 = vmatprep.subr.bf16.mxu1 %v1566_v0 }
 0x53d   :  { %873 = vmatpush1.bf16.msra.mxu0 %v1619_v9  ;;  %1331 = vmatpush3.bf16.msra.mxu1 %v1648_v18 }
 0x53e   :  { %874 = vmatprep.subr.bf16.mxu0 %v1625_v11  ;;  %1332 = vmatprep.subr.bf16.mxu1 %v1566_v0 }
 0x541   :  { %875 = vmatpush1.bf16.msra.mxu0 %v1632_v13  ;;  %1333 = vmatpush3.bf16.msra.mxu1 %v1658_v21 }
 0x542   :  { %876 = vmatprep.subr.bf16.mxu0 %v1635_v14  ;;  %1334 = vmatprep.subr.bf16.mxu1 %v1566_v0 }
 0x545   :  { %877 = vmatpush1.bf16.msra.mxu0 %v1642_v16  ;;  %1335 = vmatpush3.bf16.msra.mxu1 %v1666_v23 }
 0x546   :  { %878 = vmatprep.subr.bf16.mxu0 %v1645_v17  ;;  %1336 = vmatprep.subr.bf16.mxu1 %v1566_v0 }
 0x549   :  { %879 = vmatpush1.bf16.msra.mxu0 %v1652_v19  ;;  %1337 = vmatpush3.bf16.msra.mxu1 %v1672_v24 }
 0x54a   :  { %880 = vmatprep.subr.bf16.mxu0 %v1655_v20  ;;  %1338 = vmatprep.subr.bf16.mxu1 %v1566_v0 }
 0x54d   :  { %881 = vmatpush1.bf16.msra.mxu0 %v1662_v22  ;;  %1339 = vmatpush3.bf16.msra.mxu1 %v1680_v25 }
 0x54e   :  { %973 = vmatprep.subr.bf16.mxu0 %v1600_v2  ;;  %1344 = vmatprep.subr.bf16.mxu1 %v1566_v0 }
 0x5f0   :  { %v793_v4 = vpop.f32.mrf.mxu0  ;;  %v834_v5 = vpop.f32.mrf.mxu1 }
 0x5f1   :  { %v794_v6 = vadd.f32 %v793_v4, %v1721_v30  ;;  %v835_v27 = vadd.f32 %v834_v5, %v1727_v52  ;;  %v864_v4 = vld [vmem:[#allocation2 + $0xa0] sm:$0xff] }
 0x5f2   :  { %v795_v7 = vpop.f32.mrf.mxu0  ;;  %v1322_v8 = vpop.f32.mrf.mxu1 }
 0x5f3   :  { %v840_v9 = vadd.f32 %v794_v6, %v755_v3  ;;  %v796_v57 = vadd.f32 %v795_v7, %v1724_v35 }
 0x5f4   :  { %v797_v11 = vpop.f32.mrf.mxu0  ;;  %v837_v55 = vpop.f32.mrf.mxu1 }
 0x5f5   :  { %v1126_v56 = vmul.f32 -1.442695, %v840_v9  ;;  %v847_v2 = vadd.f32 %v796_v57, %v756_v58  ;;  %v969_v58 = vld [vmem:[#allocation2 + $0xa8] sm:$0xff] }
 0x5f6   :  { %v798_v59 = vpop.f32.mrf.mxu0  ;;  %v1323_v60 = vpop.f32.mrf.mxu1 }
 0x5f7   :  { %1456 = vpow2.f32 %v1126_v56  ;;  %v1127_v61 = vmul.f32 -1.442695, %v847_v2 }
 0x5f9   :  { %1458 = vpow2.f32 %v1127_v61 }
 0x604   :  { %v1457_v62 = vpop.eup %1456 }
 0x605   :  { %v844_v63 = vadd.f32 1.0, %v1457_v62 }
 0x606   :  { %v1459_v26 = vpop.eup %1458 }
 0x607   :  { %1460 = vrcp.f32 %v844_v63  ;;  %v851_v28 = vadd.f32 1.0, %v1459_v26 }
 0x609   :  { %1462 = vrcp.f32 %v851_v28 }
 0x614   :  { %v1461_v29 = vpop.eup %1460 }
 0x615   :  { %v854_v32 = vmul.f32 %v1461_v29, %v835_v27 }
 0x616   :  { %v1463_v34 = vpop.eup %1462 }
 0x617   :  { %v855_v33 = vadd.f32 %v854_v32, %v757_v31  ;;  %v857_v36 = vsub.f32 1.0, %v1463_v34  ;;  %v859_v39 = vmul.f32 %v1463_v34, %v1902_v53  ;;  %v970_v31 = vld [vmem:[#allocation2 + $0xb0] sm:$0xff] }
 0x619   :  { %1464 = vtanh.f32 %v855_v33 }
 0x626   :  { %v1465_v37 = vpop.eup %1464 }
 0x627   :  { %v858_v38 = vmul.f32 %v1465_v37, %v857_v36 }
 0x629   :  { %v1945_v40 = vadd.f32 %v859_v39, %v858_v38 }
 0x62b   :  { %v865_v41 = vpack.c.bf16 %v1945_v40, %v1945_v40 }
 0x62d   :  { %899 = vmatmul.mubr.bf16.vlgmr.msra.gmra.mxu0 %v865_v41  ;;  %1341 = vmatmul.mubr.bf16.vlgmr.msra.gmra.mxu1 %v865_v41 }
 0x62e   :  { %974 = vmatpush1.bf16.msra.mxu0 %v1486_v42  ;;  %1345 = vmatpush3.bf16.msra.mxu1 %v1622_v10  ;;  %v1491_v10 = vld [vmem:[#allocation5 + $0x64] ss:$12 sps:$4 sm:$0xff]   ;;  %v971_v42 = vld [vmem:[#allocation2 + $0xb8] sm:$0xff] }
 0x62f   :  { %975 = vmatprep.subr.bf16.mxu0 %v1487_v43  ;;  %1346 = vmatprep.subr.bf16.mxu1 %v1566_v0 }
 0x630   :  { %1005 = vmatprep.mubr.bf16.mxu0 %v1567_v1  ;;  %1360 = vmatprep.mubr.msk.bf16.mxu1 %vm1568_vm0, %v1566_v0  ;;  %v1492_v1 = vld [vmem:[#allocation5 + $0x60] ss:$12 sps:$4 sm:$0xff]  }
 0x632   :  { %976 = vmatpush1.bf16.msra.mxu0 %v1488_v44  ;;  %1347 = vmatpush3.bf16.msra.mxu1 %v1628_v12  ;;  %v862_v12 = vld [vmem:[#allocation2 + $0x90] sm:$0xff] }
 0x633   :  { %977 = vmatprep.subr.bf16.mxu0 %v1489_v45  ;;  %1348 = vmatprep.subr.bf16.mxu1 %v1566_v0 }
 0x636   :  { %978 = vmatpush1.bf16.msra.mxu0 %v1490_v46  ;;  %1349 = vmatpush3.bf16.msra.mxu1 %v1638_v15 }
 0x637   :  { %979 = vmatprep.subr.bf16.mxu0 %v1491_v10  ;;  %1350 = vmatprep.subr.bf16.mxu1 %v1566_v0 }
 0x63a   :  { %980 = vmatpush1.bf16.msra.mxu0 %v1492_v1  ;;  %1351 = vmatpush3.bf16.msra.mxu1 %v1648_v18 }
 0x63b   :  { %981 = vmatprep.subr.bf16.mxu0 %v1493_v47  ;;  %1352 = vmatprep.subr.bf16.mxu1 %v1566_v0 }
 0x63e   :  { %982 = vmatpush1.bf16.msra.mxu0 %v1632_v13  ;;  %1353 = vmatpush3.bf16.msra.mxu1 %v1658_v21 }
 0x63f   :  { %983 = vmatprep.subr.bf16.mxu0 %v1635_v14  ;;  %1354 = vmatprep.subr.bf16.mxu1 %v1566_v0 }
 0x642   :  { %984 = vmatpush1.bf16.msra.mxu0 %v1642_v16  ;;  %1355 = vmatpush3.bf16.msra.mxu1 %v1666_v23 }
 0x643   :  { %985 = vmatprep.subr.bf16.mxu0 %v1645_v17  ;;  %1356 = vmatprep.subr.bf16.mxu1 %v1566_v0 }
 0x646   :  { %986 = vmatpush1.bf16.msra.mxu0 %v1652_v19  ;;  %1357 = vmatpush3.bf16.msra.mxu1 %v1672_v24 }
 0x647   :  { %987 = vmatprep.subr.bf16.mxu0 %v1655_v20  ;;  %1358 = vmatprep.subr.bf16.mxu1 %v1566_v0  ;;  %v863_v20 = vld [vmem:[#allocation2 + $0x98] sm:$0xff] }
 0x64a   :  { %988 = vmatpush1.bf16.msra.mxu0 %v1662_v22  ;;  %1359 = vmatpush3.bf16.msra.mxu1 %v1680_v25 }
 0x6ed   :  { %v900_v13 = vpop.f32.mrf.mxu0  ;;  %v941_v14 = vpop.f32.mrf.mxu1 }
 0x6ee   :  { %v901_v15 = vadd.f32 %v900_v13, %v1721_v30  ;;  %v942_v54 = vadd.f32 %v941_v14, %v1727_v52 }
 0x6ef   :  { %v902_v16 = vpop.f32.mrf.mxu0  ;;  %v1342_v17 = vpop.f32.mrf.mxu1 }
 0x6f0   :  { %v947_v18 = vadd.f32 %v901_v15, %v862_v12  ;;  %v903_v24 = vadd.f32 %v902_v16, %v1724_v35 }
 0x6f1   :  { %v904_v21 = vpop.f32.mrf.mxu0  ;;  %v944_v19 = vpop.f32.mrf.mxu1 }
 0x6f2   :  { %v1128_v23 = vmul.f32 -1.442695, %v947_v18  ;;  %v954_v22 = vadd.f32 %v903_v24, %v863_v20 }
 0x6f3   :  { %v905_v48 = vpop.f32.mrf.mxu0  ;;  %v1343_v0 = vpop.f32.mrf.mxu1 }
 0x6f4   :  { %1466 = vpow2.f32 %v1128_v23  ;;  %v1129_v49 = vmul.f32 -1.442695, %v954_v22 }
 0x6f6   :  { %1468 = vpow2.f32 %v1129_v49 }
 0x701   :  { %v1467_v25 = vpop.eup %1466 }
 0x702   :  { %v951_v50 = vadd.f32 1.0, %v1467_v25 }
 0x703   :  { %v1469_v51 = vpop.eup %1468 }
 0x704   :  { %1470 = vrcp.f32 %v951_v50  ;;  %v958_v53 = vadd.f32 1.0, %v1469_v51 }
 0x706   :  { %1472 = vrcp.f32 %v958_v53 }
 0x711   :  { %v1471_v3 = vpop.eup %1470 }
 0x712   :  { %v961_v5 = vmul.f32 %v1471_v3, %v942_v54 }
 0x713   :  { %v1473_v7 = vpop.eup %1472 }
 0x714   :  { %v962_v6 = vadd.f32 %v961_v5, %v864_v4  ;;  %v964_v8 = vsub.f32 1.0, %v1473_v7  ;;  %v966_v55 = vmul.f32 %v1473_v7, %v1945_v40 }
 0x716   :  { %1474 = vtanh.f32 %v962_v6 }
 0x723   :  { %v1475_v9 = vpop.eup %1474 }
 0x724   :  { %v965_v11 = vmul.f32 %v1475_v9, %v964_v8 }
 0x726   :  { %v967_v56 = vadd.f32 %v966_v55, %v965_v11 }
 0x728   :  { %v972_v57 = vpack.c.bf16 %v967_v56, %v967_v56 }
 0x72a   :  { %1006 = vmatmul.mubr.bf16.vlgmr.msra.gmra.mxu0 %v972_v57  ;;  %1361 = vmatmul.mubr.bf16.vlgmr.msra.gmra.mxu1 %v972_v57 }
 0x7ea   :  { %v1007_v59 = vpop.f32.mrf.mxu0  ;;  %v1048_v60 = vpop.f32.mrf.mxu1 }
 0x7eb   :  { %v1008_v2 = vadd.f32 %v1007_v59, %v1721_v30  ;;  %v1049_v40 = vadd.f32 %v1048_v60, %v1727_v52 }
 0x7ec   :  { %v1009_v61 = vpop.f32.mrf.mxu0  ;;  %v1362_v62 = vpop.f32.mrf.mxu1 }
 0x7ed   :  { %v1054_v63 = vadd.f32 %v1008_v2, %v969_v58  ;;  %v1010_v29 = vadd.f32 %v1009_v61, %v1724_v35 }
 0x7ee   :  { %v1011_v26 = vpop.f32.mrf.mxu0  ;;  %v1051_v28 = vpop.f32.mrf.mxu1 }
 0x7ef   :  { %v1130_v27 = vmul.f32 -1.442695, %v1054_v63  ;;  %v1061_v34 = vadd.f32 %v1010_v29, %v970_v31 }
 0x7f0   :  { %v1012_v32 = vpop.f32.mrf.mxu0  ;;  %v1363_v33 = vpop.f32.mrf.mxu1 }
 0x7f1   :  { %1476 = vpow2.f32 %v1130_v27  ;;  %v1131_v36 = vmul.f32 -1.442695, %v1061_v34 }
 0x7f3   :  { %1478 = vpow2.f32 %v1131_v36 }
 0x7fe   :  { %v1477_v37 = vpop.eup %1476 }
 0x7ff   :  { %v1058_v38 = vadd.f32 1.0, %v1477_v37 }
 0x800   :  { %v1479_v39 = vpop.eup %1478 }
 0x801   :  { %1480 = vrcp.f32 %v1058_v38  ;;  %v1065_v30 = vadd.f32 1.0, %v1479_v39 }
 0x803   :  { %1482 = vrcp.f32 %v1065_v30 }
 0x80e   :  { %v1481_v41 = vpop.eup %1480 }
 0x80f   :  { %v1068_v43 = vmul.f32 %v1481_v41, %v1049_v40 }
 0x810   :  { %v1483_v35 = vpop.eup %1482 }
 0x811   :  { %v1069_v44 = vadd.f32 %v1068_v43, %v971_v42  ;;  %v1071_v45 = vsub.f32 1.0, %v1483_v35  ;;  %v1073_v1 = vmul.f32 %v1483_v35, %v967_v56 }
 0x813   :  { %1484 = vtanh.f32 %v1069_v44 }
 0x820   :  { %v1485_v46 = vpop.eup %1484 }
 0x821   :  { %v1072_v10 = vmul.f32 %v1485_v46, %v1071_v45 }
 0x823   :  { %v1074_v47 = vadd.f32 %v1073_v1, %v1072_v10 }
 0x825   :  { %1075 = vst [vmem:[#allocation7] sm:$0xff] %v1074_v47 }
 0x826   :  { %1545 = shalt.err (!%p1542_p0)
}
 0x827   :  { %1085 = dma.vmem_to_hbm [thread:$0]  %s1083_s26, 128, %s1987_s3, [#allocation4]  }
 0x828   :  { %1558 = dma.done.wait [#allocation4], 128  }
 0x829   :  { %1559 = vsyncadd [#allocation4], 4294967168 }
 0x82a   :  { %1089 = vsyncpa [#allocation3], 1 }
 0x82b   :  { %1090 = vsyncpa [#allocation6], 1 }
 0x82c   :  { %1091 = vsyncpa [#allocation4], 1 }

</bundles_post_ra>
